<compile_context>
chip_gen: v6e
topology: v6e:2x2x1
jax: 0.10.0
libtpu: 0.0.40
codegen_flags: <defaults>
</compile_context>

<pallas_src>
import functools

import jax
import jax.numpy as jnp
import numpy as np
from jax.experimental import pallas as pl
from jax.experimental.pallas import tpu as pltpu

EPS = 1e-5                      # torch.nn.BatchNorm1d default eps
MATMUL_DTYPE = jnp.bfloat16     # MXU operand dtype (bf16 matmul + f32 accumulate works on v5e/v6e/v7x)
ACT_DTYPE = jnp.bfloat16        # inter-layer HBM activations (halves DMA + VMEM residency)
                                # set both to jnp.float32 for strict torch-f32 parity
VMEM_LIMIT_BYTES = 48 * 1024 * 1024   # sized so tiles fit v7x's 64 MiB physical VMEM with headroom

_COMPILER_PARAMS = pltpu.CompilerParams(
    dimension_semantics=("parallel",),        # batch tiles are independent -> megacore split on v7x
    vmem_limit_bytes=VMEM_LIMIT_BYTES,
)


# ----------------------------- kernel helpers -----------------------------
def _conv_taps(pad_scr, w_ref, *, n, L, Cin, K):
    """Conv1d(k=K, stride=1, 'same') as K accumulating MXU matmuls over shifted views of the
    zero-padded activation scratch (no im2col slab)."""
    acc = None
    for k in range(K):
        tap = pad_scr[:, k:k + L, :].reshape(n * L, Cin).astype(MATMUL_DTYPE)
        y = jnp.dot(tap, w_ref[k], preferred_element_type=jnp.float32)   # f32 accumulate
        acc = y if acc is None else acc + y
    return acc                                                           # (n*L, Cout) float32


def _write_stats(stats_ref, y, H):
    """Per-tile BatchNorm partial statistics (f32): row 0 = sum, row 1 = sum of squares."""
    stats_ref[:, 0:1, :] = jnp.sum(y, axis=0, keepdims=True).reshape(1, 1, H)
    stats_ref[:, 1:2, :] = jnp.sum(y * y, axis=0, keepdims=True).reshape(1, 1, H)


# --------------------------------- kernels ---------------------------------
def _stem_kernel(x_ref, w_ref, y_ref, stats_ref, pad_scr, *, BNb, L0, C0, H, K, P):
    # (BNb, C0, L0) -> channel-last on-core (XLU transpose; no wrapper-side HBM round trip)
    xt = jnp.transpose(x_ref[...], (0, 2, 1)).astype(pad_scr.dtype)      # (BNb, L0, C0)
    pad_scr[:, 0:P, :] = jnp.zeros((BNb, P, C0), pad_scr.dtype)
    pad_scr[:, P + L0:, :] = jnp.zeros((BNb, P, C0), pad_scr.dtype)
    pad_scr[:, P:P + L0, :] = xt
    # NOTE: the Conv1d bias is omitted on purpose: train-mode BN subtracts the batch mean, which
    # cancels a per-channel constant exactly, so the forward output is unchanged.
    y = _conv_taps(pad_scr, w_ref, n=BNb, L=L0, Cin=C0, K=K)             # (BNb*L0, H) f32
    _write_stats(stats_ref, y, H)
    y_ref[...] = y.reshape(BNb, L0, H).astype(y_ref.dtype)


def _mid_kernel(y_in_ref, ss_ref, w_ref, y_out_ref, stats_ref, act_scr, pad_scr,
                *, BNb, L_in, H, K, P, pool):
    L_out = L_in // pool
    # fused BN affine (scale/shift precomputed from the combined batch stats) + ReLU, staged in a
    # VMEM scratch so the max-pool phases can be read back as strided slices (no value-domain
    # sublane gather on the activation).
    yin = y_in_ref[...].astype(jnp.float32)                              # (BNb, L_in, H)
    act = jnp.maximum(yin * ss_ref[0:1, :] + ss_ref[1:2, :], 0.0)
    act_scr[...] = act.reshape(BNb * L_in, H)
    # MaxPool1d(pool, pool): elementwise max of the `pool` strided phases (valid because L_in is a
    # multiple of pool, so flat-row parity == within-sample parity).
    m = act_scr[pl.ds(0, BNb * L_out, stride=pool), :]
    for p in range(1, pool):
        m = jnp.maximum(m, act_scr[pl.ds(p, BNb * L_out, stride=pool), :])
    # zero-padded ('same') activation for this layer's conv, kept in the MXU operand dtype
    pad_scr[:, 0:P, :] = jnp.zeros((BNb, P, H), pad_scr.dtype)
    pad_scr[:, P + L_out:, :] = jnp.zeros((BNb, P, H), pad_scr.dtype)
    pad_scr[:, P:P + L_out, :] = m.reshape(BNb, L_out, H).astype(pad_scr.dtype)
    y = _conv_taps(pad_scr, w_ref, n=BNb, L=L_out, Cin=H, K=K)           # (BNb*L_out, H) f32
    _write_stats(stats_ref, y, H)
    y_out_ref[...] = y.reshape(BNb, L_out, H).astype(y_out_ref.dtype)


def _head_kernel(y_in_ref, ss_ref, o_ref, act_scr, *, BNb, L_in, H, pool):
    L_out = L_in // pool
    yin = y_in_ref[...].astype(jnp.float32)
    act_scr[...] = jnp.maximum(yin * ss_ref[0:1, :] + ss_ref[1:2, :], 0.0).reshape(BNb * L_in, H)
    m = act_scr[pl.ds(0, BNb * L_out, stride=pool), :]
    for p in range(1, pool):
        m = jnp.maximum(m, act_scr[pl.ds(p, BNb * L_out, stride=pool), :])
    o_ref[...] = m.reshape(BNb, L_out, H).astype(o_ref.dtype)


# --------------------------------- wrapper ---------------------------------
def _fold_stats(part, gamma, beta, count):
    """Combine per-tile [sum; sumsq] partials and fold train-mode BN into one scale + shift."""
    s = jnp.sum(part, axis=0)                                            # (2, H) f32
    mean = s[0] / count
    # TODO(synk): E[y^2]-mean^2 in f32 is cancellation-prone for huge activations; clamp guards it,
    # a centered second pass would give bit-exact torch parity.
    var = jnp.maximum(s[1] / count - mean * mean, 0.0)
    scale = gamma * jax.lax.rsqrt(var + EPS)
    shift = beta - mean * scale
    return jnp.stack([scale, shift], axis=0).astype(jnp.float32)         # (2, H)


def net4cnn_forward(x_ncl, params, pool=2, block_n=None):
    """Mirrors Net4CNN.forward (train-mode BN): cast to f32, 4 ConvBlocks, flatten (N, -1)."""
    N, C0, L0 = x_ncl.shape
    layers = len(params)
    K, _, H = params[0][0].shape
    P = (K - 1) // 2
    assert L0 % (pool ** layers) == 0, "sequence length must be divisible by pool**layers"
    # TODO(synk): odd lengths (torch floor-drops the tail in MaxPool1d) need a masked pool phase.

    conv_len = [L0 // (pool ** i) for i in range(layers)]                # conv-output length / layer
    L_final = L0 // (pool ** layers)

    if block_n is None:                                                  # ~2K rows per tile target
        block_n = max(1, min(N, 2048 // max(L0, 1)))
    block_n = max(1, min(block_n, N))
    while N % block_n:
        block_n -= 1
    nt = N // block_n
    # TODO(synk): for very long L0, additionally tile along L with a halo of P rows per side.

    x32 = x_ncl.astype(jnp.float32)                                      # torch: x.type(FloatTensor)
    ws = [w.astype(MATMUL_DTYPE) for (w, _b, _g, _be) in params]         # (K, Cin, H) bf16 operands

    # ---- layer 0: conv only (BN-0 stats come out as per-tile partials) ----
    y, part = pl.pallas_call(
        functools.partial(_stem_kernel, BNb=block_n, L0=L0, C0=C0, H=H, K=K, P=P),
        grid=(nt,),
        in_specs=[
            pl.BlockSpec((block_n, C0, L0), lambda i: (i, 0, 0)),
            pl.BlockSpec((K, C0, H), lambda i: (0, 0, 0)),               # constant block -> resident
        ],
        out_specs=[
            pl.BlockSpec((block_n, L0, H), lambda i: (i, 0, 0)),
            pl.BlockSpec((1, 2, H), lambda i: (i, 0, 0)),
        ],
        out_shape=[
            jax.ShapeDtypeStruct((N, L0, H), ACT_DTYPE),
            jax.ShapeDtypeStruct((nt, 2, H), jnp.float32),
        ],
        scratch_shapes=[pltpu.VMEM((block_n, L0 + 2 * P, C0), MATMUL_DTYPE)],
        compiler_params=_COMPILER_PARAMS,
    )(x32, ws[0])

    # ---- layers 1..layers-1: BN(i-1) + ReLU + pool fused with conv(i) ----
    for li in range(1, layers):
        _w, _b, gamma, beta = params[li - 1]
        ss = _fold_stats(part, gamma, beta, N * conv_len[li - 1])
        L_in, L_out = conv_len[li - 1], conv_len[li]
        y, part = pl.pallas_call(
            functools.partial(_mid_kernel, BNb=block_n, L_in=L_in, H=H, K=K, P=P, pool=pool),
            grid=(nt,),
            in_specs=[
                pl.BlockSpec((block_n, L_in, H), lambda i: (i, 0, 0)),
                pl.BlockSpec((2, H), lambda i: (0, 0)),
                pl.BlockSpec((K, H, H), lambda i: (0, 0, 0)),
            ],
            out_specs=[
                pl.BlockSpec((block_n, L_out, H), lambda i: (i, 0, 0)),
                pl.BlockSpec((1, 2, H), lambda i: (i, 0, 0)),
            ],
            out_shape=[
                jax.ShapeDtypeStruct((N, L_out, H), ACT_DTYPE),
                jax.ShapeDtypeStruct((nt, 2, H), jnp.float32),
            ],
            scratch_shapes=[
                pltpu.VMEM((block_n * L_in, H), jnp.float32),            # BN+ReLU staging (pool src)
                pltpu.VMEM((block_n, L_out + 2 * P, H), MATMUL_DTYPE),   # padded conv input
            ],
            compiler_params=_COMPILER_PARAMS,
        )(y, ss, ws[li])

    # ---- final BN + ReLU + pool ----
    _w, _b, gamma, beta = params[layers - 1]
    ss = _fold_stats(part, gamma, beta, N * conv_len[layers - 1])
    L_in = conv_len[layers - 1]
    out = pl.pallas_call(
        functools.partial(_head_kernel, BNb=block_n, L_in=L_in, H=H, pool=pool),
        grid=(nt,),
        in_specs=[
            pl.BlockSpec((block_n, L_in, H), lambda i: (i, 0, 0)),
            pl.BlockSpec((2, H), lambda i: (0, 0)),
        ],
        out_specs=pl.BlockSpec((block_n, L_final, H), lambda i: (i, 0, 0)),
        out_shape=jax.ShapeDtypeStruct((N, L_final, H), jnp.float32),
        scratch_shapes=[pltpu.VMEM((block_n * L_in, H), jnp.float32)],
        compiler_params=_COMPILER_PARAMS,
    )(y, ss)

    # TODO(synk): fold this transpose into the head kernel's out_spec ((N, H, Lf)) — it is the
    # smallest tensor in the network (length already pooled 2**layers times).
    return jnp.transpose(out, (0, 2, 1)).reshape(N, -1)                  # torch flatten order c*Lf+l


# ------------------------- pure-JAX reference + init -------------------------
def net4cnn_reference(x_ncl, params, pool=2):
    """Pure-JAX mirror of the torch module's train-mode forward, using the same dtype strategy as
    the kernel (bf16 matmul operands / inter-layer rounding, f32 stats & elementwise)."""
    N = x_ncl.shape[0]
    cur = jnp.transpose(x_ncl.astype(jnp.float32), (0, 2, 1))            # (N, L, C)
    for (w, b, gamma, beta) in params:
        K, _Cin, H = w.shape
        P = (K - 1) // 2
        L = cur.shape[1]
        xp = jnp.pad(cur.astype(MATMUL_DTYPE), ((0, 0), (P, P), (0, 0)))
        y = sum(jnp.einsum('nlc,ch->nlh', xp[:, k:k + L, :], w[k].astype(MATMUL_DTYPE),
                           preferred_element_type=jnp.float32) for k in range(K))
        y = y + b                                                        # Conv1d bias (BN cancels it)
        mean = y.mean(axis=(0, 1))
        var = jnp.maximum((y * y).mean(axis=(0, 1)) - mean * mean, 0.0)
        y = y.astype(ACT_DTYPE).astype(jnp.float32)                      # inter-layer rounding
        y = jnp.maximum((y - mean) * jax.lax.rsqrt(var + EPS) * gamma + beta, 0.0)
        Lp = L // pool
        cur = y[:, :Lp * pool, :].reshape(N, Lp, pool, H).max(axis=2)
    return jnp.transpose(cur, (0, 2, 1)).reshape(N, -1)


def init_params(key, channels, hidden, layers, kernel_size=3):
    """Deterministic params matching the PyTorch module's shapes.
    Conv1d default-style init (uniform +/- 1/sqrt(fan_in)); BN: gamma=1, beta=0."""
    params = []
    cin = channels
    for _ in range(layers):
        key, k1, k2 = jax.random.split(key, 3)
        bound = 1.0 / (cin * kernel_size) ** 0.5
        w = jax.random.uniform(k1, (kernel_size, cin, hidden), jnp.float32, -bound, bound)
        b = jax.random.uniform(k2, (hidden,), jnp.float32, -bound, bound)  # cancelled by BN mean
        gamma = jnp.ones((hidden,), jnp.float32)
        beta = jnp.zeros((hidden,), jnp.float32)
        params.append((w, b, gamma, beta))
        cin = hidden
    return params


if __name__ == "__main__":
    key = jax.random.PRNGKey(0)
    kx, kp = jax.random.split(key)

    batch, channels, length = 2, 4, 16
    hidden, layers = 32, 4

    x = jax.random.normal(kx, (batch, channels, length), jnp.float32)    # PyTorch NCL input
    params = init_params(kp, channels, hidden, layers)

    # block_n=1 -> 2 grid tiles: exercises the batch-tiled path and the cross-tile BN-stat combine.
    fwd = jax.jit(functools.partial(net4cnn_forward, pool=2, block_n=1))
    out = fwd(x, params)
    jax.block_until_ready(out)

    # L: 16 -> 8 -> 4 -> 2 -> 1, so features = hidden * 1
    assert out.shape == (batch, hidden * (length // 2 ** layers)), out.shape

    # loose tolerance: only real structural bugs (padding / pooling / stats / ordering) exceed it;
    # the residual is bf16 rounding of the (bias-included vs bias-folded) conv output.
    ref = net4cnn_reference(x, params)
    np.testing.assert_allclose(np.asarray(out), np.asarray(ref), atol=1e-1, rtol=0.0)

    print("KERNEL_OK")
</pallas_src>

<mosaic_0001>
module attributes {stable_mosaic.version = 11 : i64} {
  func.func @_stem_kernel(%arg0: i32, %arg1: memref<1x4x16xf32, #tpu.memory_space<vmem>>, %arg2: memref<3x4x32xbf16, #tpu.memory_space<vmem>>, %arg3: memref<1x16x32xbf16, #tpu.memory_space<vmem>>, %arg4: memref<1x2x32xf32, #tpu.memory_space<vmem>>, %arg5: memref<1x18x4xbf16, #tpu.memory_space<vmem>>) attributes {dimension_semantics = [#tpu.dimension_semantics<parallel>], iteration_bounds = array<i64: 2>, scalar_prefetch = 0 : i64, scratch_operands = 1 : i64, tpu.core_type = #tpu.core_type<tc>, window_params = [{transform_indices = @transform_0, window_bounds = array<i64: 1, 4, 16>}, {pipeline_mode = #tpu.pipeline_mode<synchronous>, transform_indices = @transform_1, window_bounds = array<i64: 3, 4, 32>}, {transform_indices = @transform_2, window_bounds = array<i64: 1, 16, 32>}, {transform_indices = @transform_3, window_bounds = array<i64: 1, 2, 32>}]} {
    %c0 = arith.constant 0 : index
    %c0_0 = arith.constant 0 : index
    %c0_1 = arith.constant 0 : index
    %0 = vector.load %arg1[%c0, %c0_0, %c0_1] : memref<1x4x16xf32, #tpu.memory_space<vmem>>, vector<1x4x16xf32>
    %1 = tpu.transpose %0, [0, 2, 1] : vector<1x4x16xf32> -> vector<1x16x4xf32>
    %2 = arith.truncf %1 : vector<1x16x4xf32> to vector<1x16x4xbf16>
    %cst = arith.constant 0.000000e+00 : bf16
    %3 = vector.broadcast %cst : bf16 to vector<1x1x4xbf16>
    %c0_2 = arith.constant 0 : index
    %c0_3 = arith.constant 0 : index
    %c0_4 = arith.constant 0 : index
    %4 = vector.load %arg5[%c0_2, %c0_3, %c0_4] : memref<1x18x4xbf16, #tpu.memory_space<vmem>>, vector<1x1x4xbf16>
    tpu.vector_store %arg5[%c0_2, %c0_3, %c0_4], %3 {strides = array<i32>} : memref<1x18x4xbf16, #tpu.memory_space<vmem>>, vector<1x1x4xbf16>,
    %cst_5 = arith.constant 0.000000e+00 : bf16
    %5 = vector.broadcast %cst_5 : bf16 to vector<1x1x4xbf16>
    %c0_6 = arith.constant 0 : index
    %c17 = arith.constant 17 : index
    %c0_7 = arith.constant 0 : index
    %6 = vector.load %arg5[%c0_6, %c17, %c0_7] : memref<1x18x4xbf16, #tpu.memory_space<vmem>>, vector<1x1x4xbf16>
    tpu.vector_store %arg5[%c0_6, %c17, %c0_7], %5 {strides = array<i32>} : memref<1x18x4xbf16, #tpu.memory_space<vmem>>, vector<1x1x4xbf16>,
    %c0_8 = arith.constant 0 : index
    %c1 = arith.constant 1 : index
    %c0_9 = arith.constant 0 : index
    %7 = vector.load %arg5[%c0_8, %c1, %c0_9] : memref<1x18x4xbf16, #tpu.memory_space<vmem>>, vector<1x16x4xbf16>
    tpu.vector_store %arg5[%c0_8, %c1, %c0_9], %2 {strides = array<i32>} : memref<1x18x4xbf16, #tpu.memory_space<vmem>>, vector<1x16x4xbf16>,
    %c0_10 = arith.constant 0 : index
    %c0_11 = arith.constant 0 : index
    %c0_12 = arith.constant 0 : index
    %8 = vector.load %arg5[%c0_10, %c0_11, %c0_12] : memref<1x18x4xbf16, #tpu.memory_space<vmem>>, vector<1x16x4xbf16>
    %9 = vector.shape_cast %8 : vector<1x16x4xbf16> to vector<16x4xbf16>
    %c0_13 = arith.constant 0 : index
    %c0_14 = arith.constant 0 : index
    %c0_15 = arith.constant 0 : index
    %10 = vector.load %arg2[%c0_13, %c0_14, %c0_15] : memref<3x4x32xbf16, #tpu.memory_space<vmem>>, vector<1x4x32xbf16>
    %11 = vector.shape_cast %10 : vector<1x4x32xbf16> to vector<4x32xbf16>
    %cst_16 = arith.constant dense<0.000000e+00> : vector<16x32xf32>
    %12 = tpu.matmul %9, %11, %cst_16 {dimension_numbers = #tpu.dot_dimension_numbers<[1], [0], [0], [1], [0, 0, 1, 1], [], []>} : vector<16x4xbf16>, vector<4x32xbf16>, vector<16x32xf32> -> vector<16x32xf32>
    %c0_17 = arith.constant 0 : index
    %c1_18 = arith.constant 1 : index
    %c0_19 = arith.constant 0 : index
    %13 = vector.load %arg5[%c0_17, %c1_18, %c0_19] : memref<1x18x4xbf16, #tpu.memory_space<vmem>>, vector<1x16x4xbf16>
    %14 = vector.shape_cast %13 : vector<1x16x4xbf16> to vector<16x4xbf16>
    %c1_20 = arith.constant 1 : index
    %c0_21 = arith.constant 0 : index
    %c0_22 = arith.constant 0 : index
    %15 = vector.load %arg2[%c1_20, %c0_21, %c0_22] : memref<3x4x32xbf16, #tpu.memory_space<vmem>>, vector<1x4x32xbf16>
    %16 = vector.shape_cast %15 : vector<1x4x32xbf16> to vector<4x32xbf16>
    %cst_23 = arith.constant dense<0.000000e+00> : vector<16x32xf32>
    %17 = tpu.matmul %14, %16, %cst_23 {dimension_numbers = #tpu.dot_dimension_numbers<[1], [0], [0], [1], [0, 0, 1, 1], [], []>} : vector<16x4xbf16>, vector<4x32xbf16>, vector<16x32xf32> -> vector<16x32xf32>
    %18 = arith.addf %12, %17 : vector<16x32xf32>
    %c0_24 = arith.constant 0 : index
    %c2 = arith.constant 2 : index
    %c0_25 = arith.constant 0 : index
    %19 = vector.load %arg5[%c0_24, %c2, %c0_25] : memref<1x18x4xbf16, #tpu.memory_space<vmem>>, vector<1x16x4xbf16>
    %20 = vector.shape_cast %19 : vector<1x16x4xbf16> to vector<16x4xbf16>
    %c2_26 = arith.constant 2 : index
    %c0_27 = arith.constant 0 : index
    %c0_28 = arith.constant 0 : index
    %21 = vector.load %arg2[%c2_26, %c0_27, %c0_28] : memref<3x4x32xbf16, #tpu.memory_space<vmem>>, vector<1x4x32xbf16>
    %22 = vector.shape_cast %21 : vector<1x4x32xbf16> to vector<4x32xbf16>
    %cst_29 = arith.constant dense<0.000000e+00> : vector<16x32xf32>
    %23 = tpu.matmul %20, %22, %cst_29 {dimension_numbers = #tpu.dot_dimension_numbers<[1], [0], [0], [1], [0, 0, 1, 1], [], []>} : vector<16x4xbf16>, vector<4x32xbf16>, vector<16x32xf32> -> vector<16x32xf32>
    %24 = arith.addf %18, %23 : vector<16x32xf32>
    %cst_30 = arith.constant dense<0.000000e+00> : vector<32xf32>
    %25 = vector.multi_reduction <add>, %24, %cst_30 [0] : vector<16x32xf32> to vector<32xf32>
    %26 = vector.shape_cast %25 : vector<32xf32> to vector<1x32xf32>
    %27 = vector.shape_cast %26 : vector<1x32xf32> to vector<1x1x32xf32>
    %c0_31 = arith.constant 0 : index
    %c0_32 = arith.constant 0 : index
    %c0_33 = arith.constant 0 : index
    %28 = vector.load %arg4[%c0_31, %c0_32, %c0_33] : memref<1x2x32xf32, #tpu.memory_space<vmem>>, vector<1x1x32xf32>
    tpu.vector_store %arg4[%c0_31, %c0_32, %c0_33], %27 {strides = array<i32>} : memref<1x2x32xf32, #tpu.memory_space<vmem>>, vector<1x1x32xf32>,
    %29 = arith.mulf %24, %24 : vector<16x32xf32>
    %cst_34 = arith.constant dense<0.000000e+00> : vector<32xf32>
    %30 = vector.multi_reduction <add>, %29, %cst_34 [0] : vector<16x32xf32> to vector<32xf32>
    %31 = vector.shape_cast %30 : vector<32xf32> to vector<1x32xf32>
    %32 = vector.shape_cast %31 : vector<1x32xf32> to vector<1x1x32xf32>
    %c0_35 = arith.constant 0 : index
    %c1_36 = arith.constant 1 : index
    %c0_37 = arith.constant 0 : index
    %33 = vector.load %arg4[%c0_35, %c1_36, %c0_37] : memref<1x2x32xf32, #tpu.memory_space<vmem>>, vector<1x1x32xf32>
    tpu.vector_store %arg4[%c0_35, %c1_36, %c0_37], %32 {strides = array<i32>} : memref<1x2x32xf32, #tpu.memory_space<vmem>>, vector<1x1x32xf32>,
    %34 = vector.shape_cast %24 : vector<16x32xf32> to vector<1x16x32xf32>
    %35 = arith.truncf %34 : vector<1x16x32xf32> to vector<1x16x32xbf16>
    %c0_38 = arith.constant 0 : index
    %c0_39 = arith.constant 0 : index
    %c0_40 = arith.constant 0 : index
    %36 = vector.load %arg3[%c0_38, %c0_39, %c0_40] : memref<1x16x32xbf16, #tpu.memory_space<vmem>>, vector<1x16x32xbf16>
    tpu.vector_store %arg3[%c0_38, %c0_39, %c0_40], %35 {strides = array<i32>} : memref<1x16x32xbf16, #tpu.memory_space<vmem>>, vector<1x16x32xbf16>,
    return
  }
  func.func @transform_0(%arg0: i32) -> (i32, i32, i32) {
    %c0_i32 = arith.constant 0 : i32
    %c0_i32_0 = arith.constant 0 : i32
    %c0_i32_1 = arith.constant 0 : i32
    return %arg0, %c0_i32, %c0_i32_0 : i32, i32, i32
  }
  func.func @transform_1(%arg0: i32) -> (i32, i32, i32) {
    %c0_i32 = arith.constant 0 : i32
    %c0_i32_0 = arith.constant 0 : i32
    %c0_i32_1 = arith.constant 0 : i32
    %c0_i32_2 = arith.constant 0 : i32
    return %c0_i32, %c0_i32_0, %c0_i32_1 : i32, i32, i32
  }
  func.func @transform_2(%arg0: i32) -> (i32, i32, i32) {
    %c0_i32 = arith.constant 0 : i32
    %c0_i32_0 = arith.constant 0 : i32
    %c0_i32_1 = arith.constant 0 : i32
    return %arg0, %c0_i32, %c0_i32_0 : i32, i32, i32
  }
  func.func @transform_3(%arg0: i32) -> (i32, i32, i32) {
    %c0_i32 = arith.constant 0 : i32
    %c0_i32_0 = arith.constant 0 : i32
    %c0_i32_1 = arith.constant 0 : i32
    return %arg0, %c0_i32, %c0_i32_0 : i32, i32, i32
  }
}

module attributes {stable_mosaic.version = 11 : i64} {
  func.func @_mid_kernel(%arg0: i32, %arg1: memref<1x16x32xbf16, #tpu.memory_space<vmem>>, %arg2: memref<2x32xf32, #tpu.memory_space<vmem>>, %arg3: memref<3x32x32xbf16, #tpu.memory_space<vmem>>, %arg4: memref<1x8x32xbf16, #tpu.memory_space<vmem>>, %arg5: memref<1x2x32xf32, #tpu.memory_space<vmem>>, %arg6: memref<16x32xf32, #tpu.memory_space<vmem>>, %arg7: memref<1x10x32xbf16, #tpu.memory_space<vmem>>) attributes {dimension_semantics = [#tpu.dimension_semantics<parallel>], iteration_bounds = array<i64: 2>, scalar_prefetch = 0 : i64, scratch_operands = 2 : i64, tpu.core_type = #tpu.core_type<tc>, window_params = [{transform_indices = @transform_0, window_bounds = array<i64: 1, 16, 32>}, {pipeline_mode = #tpu.pipeline_mode<synchronous>, transform_indices = @transform_1, window_bounds = array<i64: 2, 32>}, {pipeline_mode = #tpu.pipeline_mode<synchronous>, transform_indices = @transform_2, window_bounds = array<i64: 3, 32, 32>}, {transform_indices = @transform_3, window_bounds = array<i64: 1, 8, 32>}, {transform_indices = @transform_4, window_bounds = array<i64: 1, 2, 32>}]} {
    %c0 = arith.constant 0 : index
    %c0_0 = arith.constant 0 : index
    %c0_1 = arith.constant 0 : index
    %0 = vector.load %arg1[%c0, %c0_0, %c0_1] : memref<1x16x32xbf16, #tpu.memory_space<vmem>>, vector<1x16x32xbf16>
    %1 = arith.extf %0 : vector<1x16x32xbf16> to vector<1x16x32xf32>
    %c0_2 = arith.constant 0 : index
    %c0_3 = arith.constant 0 : index
    %2 = vector.load %arg2[%c0_2, %c0_3] : memref<2x32xf32, #tpu.memory_space<vmem>>, vector<1x32xf32>
    %3 = vector.shape_cast %2 : vector<1x32xf32> to vector<1x1x32xf32>
    %4 = vector.broadcast %3 : vector<1x1x32xf32> to vector<1x16x32xf32>
    %5 = arith.mulf %1, %4 : vector<1x16x32xf32>
    %c1 = arith.constant 1 : index
    %c0_4 = arith.constant 0 : index
    %6 = vector.load %arg2[%c1, %c0_4] : memref<2x32xf32, #tpu.memory_space<vmem>>, vector<1x32xf32>
    %7 = vector.shape_cast %6 : vector<1x32xf32> to vector<1x1x32xf32>
    %8 = vector.broadcast %7 : vector<1x1x32xf32> to vector<1x16x32xf32>
    %9 = arith.addf %5, %8 : vector<1x16x32xf32>
    %cst = arith.constant 0.000000e+00 : f32
    %10 = vector.broadcast %cst : f32 to vector<1x16x32xf32>
    %11 = arith.maximumf %9, %10 : vector<1x16x32xf32>
    %12 = vector.shape_cast %11 : vector<1x16x32xf32> to vector<16x32xf32>
    %c0_5 = arith.constant 0 : index
    %c0_6 = arith.constant 0 : index
    %13 = vector.load %arg6[%c0_5, %c0_6] : memref<16x32xf32, #tpu.memory_space<vmem>>, vector<16x32xf32>
    tpu.vector_store %arg6[%c0_5, %c0_6], %12 {strides = array<i32>} : memref<16x32xf32, #tpu.memory_space<vmem>>, vector<16x32xf32>,
    %c0_7 = arith.constant 0 : index
    %c0_8 = arith.constant 0 : index
    %14 = tpu.strided_load %arg6[%c0_7, %c0_8] {strides = array<i32: 2, 1>} : memref<16x32xf32, #tpu.memory_space<vmem>>, vector<8x32xf32>
    %c1_9 = arith.constant 1 : index
    %c0_10 = arith.constant 0 : index
    %15 = tpu.strided_load %arg6[%c1_9, %c0_10] {strides = array<i32: 2, 1>} : memref<16x32xf32, #tpu.memory_space<vmem>>, vector<8x32xf32>
    %16 = arith.maximumf %14, %15 : vector<8x32xf32>
    %cst_11 = arith.constant 0.000000e+00 : bf16
    %17 = vector.broadcast %cst_11 : bf16 to vector<1x1x32xbf16>
    %c0_12 = arith.constant 0 : index
    %c0_13 = arith.constant 0 : index
    %c0_14 = arith.constant 0 : index
    %18 = vector.load %arg7[%c0_12, %c0_13, %c0_14] : memref<1x10x32xbf16, #tpu.memory_space<vmem>>, vector<1x1x32xbf16>
    tpu.vector_store %arg7[%c0_12, %c0_13, %c0_14], %17 {strides = array<i32>} : memref<1x10x32xbf16, #tpu.memory_space<vmem>>, vector<1x1x32xbf16>,
    %cst_15 = arith.constant 0.000000e+00 : bf16
    %19 = vector.broadcast %cst_15 : bf16 to vector<1x1x32xbf16>
    %c0_16 = arith.constant 0 : index
    %c9 = arith.constant 9 : index
    %c0_17 = arith.constant 0 : index
    %20 = vector.load %arg7[%c0_16, %c9, %c0_17] : memref<1x10x32xbf16, #tpu.memory_space<vmem>>, vector<1x1x32xbf16>
    tpu.vector_store %arg7[%c0_16, %c9, %c0_17], %19 {strides = array<i32>} : memref<1x10x32xbf16, #tpu.memory_space<vmem>>, vector<1x1x32xbf16>,
    %21 = vector.shape_cast %16 : vector<8x32xf32> to vector<1x8x32xf32>
    %22 = arith.truncf %21 : vector<1x8x32xf32> to vector<1x8x32xbf16>
    %c0_18 = arith.constant 0 : index
    %c1_19 = arith.constant 1 : index
    %c0_20 = arith.constant 0 : index
    %23 = vector.load %arg7[%c0_18, %c1_19, %c0_20] : memref<1x10x32xbf16, #tpu.memory_space<vmem>>, vector<1x8x32xbf16>
    tpu.vector_store %arg7[%c0_18, %c1_19, %c0_20], %22 {strides = array<i32>} : memref<1x10x32xbf16, #tpu.memory_space<vmem>>, vector<1x8x32xbf16>,
    %c0_21 = arith.constant 0 : index
    %c0_22 = arith.constant 0 : index
    %c0_23 = arith.constant 0 : index
    %24 = vector.load %arg7[%c0_21, %c0_22, %c0_23] : memref<1x10x32xbf16, #tpu.memory_space<vmem>>, vector<1x8x32xbf16>
    %25 = vector.shape_cast %24 : vector<1x8x32xbf16> to vector<8x32xbf16>
    %c0_24 = arith.constant 0 : index
    %c0_25 = arith.constant 0 : index
    %c0_26 = arith.constant 0 : index
    %26 = vector.load %arg3[%c0_24, %c0_25, %c0_26] : memref<3x32x32xbf16, #tpu.memory_space<vmem>>, vector<1x32x32xbf16>
    %27 = vector.shape_cast %26 : vector<1x32x32xbf16> to vector<32x32xbf16>
    %cst_27 = arith.constant dense<0.000000e+00> : vector<8x32xf32>
    %28 = tpu.matmul %25, %27, %cst_27 {dimension_numbers = #tpu.dot_dimension_numbers<[1], [0], [0], [1], [0, 0, 1, 1], [], []>} : vector<8x32xbf16>, vector<32x32xbf16>, vector<8x32xf32> -> vector<8x32xf32>
    %c0_28 = arith.constant 0 : index
    %c1_29 = arith.constant 1 : index
    %c0_30 = arith.constant 0 : index
    %29 = vector.load %arg7[%c0_28, %c1_29, %c0_30] : memref<1x10x32xbf16, #tpu.memory_space<vmem>>, vector<1x8x32xbf16>
    %30 = vector.shape_cast %29 : vector<1x8x32xbf16> to vector<8x32xbf16>
    %c1_31 = arith.constant 1 : index
    %c0_32 = arith.constant 0 : index
    %c0_33 = arith.constant 0 : index
    %31 = vector.load %arg3[%c1_31, %c0_32, %c0_33] : memref<3x32x32xbf16, #tpu.memory_space<vmem>>, vector<1x32x32xbf16>
    %32 = vector.shape_cast %31 : vector<1x32x32xbf16> to vector<32x32xbf16>
    %cst_34 = arith.constant dense<0.000000e+00> : vector<8x32xf32>
    %33 = tpu.matmul %30, %32, %cst_34 {dimension_numbers = #tpu.dot_dimension_numbers<[1], [0], [0], [1], [0, 0, 1, 1], [], []>} : vector<8x32xbf16>, vector<32x32xbf16>, vector<8x32xf32> -> vector<8x32xf32>
    %34 = arith.addf %28, %33 : vector<8x32xf32>
    %c0_35 = arith.constant 0 : index
    %c2 = arith.constant 2 : index
    %c0_36 = arith.constant 0 : index
    %35 = vector.load %arg7[%c0_35, %c2, %c0_36] : memref<1x10x32xbf16, #tpu.memory_space<vmem>>, vector<1x8x32xbf16>
    %36 = vector.shape_cast %35 : vector<1x8x32xbf16> to vector<8x32xbf16>
    %c2_37 = arith.constant 2 : index
    %c0_38 = arith.constant 0 : index
    %c0_39 = arith.constant 0 : index
    %37 = vector.load %arg3[%c2_37, %c0_38, %c0_39] : memref<3x32x32xbf16, #tpu.memory_space<vmem>>, vector<1x32x32xbf16>
    %38 = vector.shape_cast %37 : vector<1x32x32xbf16> to vector<32x32xbf16>
    %cst_40 = arith.constant dense<0.000000e+00> : vector<8x32xf32>
    %39 = tpu.matmul %36, %38, %cst_40 {dimension_numbers = #tpu.dot_dimension_numbers<[1], [0], [0], [1], [0, 0, 1, 1], [], []>} : vector<8x32xbf16>, vector<32x32xbf16>, vector<8x32xf32> -> vector<8x32xf32>
    %40 = arith.addf %34, %39 : vector<8x32xf32>
    %cst_41 = arith.constant dense<0.000000e+00> : vector<32xf32>
    %41 = vector.multi_reduction <add>, %40, %cst_41 [0] : vector<8x32xf32> to vector<32xf32>
    %42 = vector.shape_cast %41 : vector<32xf32> to vector<1x32xf32>
    %43 = vector.shape_cast %42 : vector<1x32xf32> to vector<1x1x32xf32>
    %c0_42 = arith.constant 0 : index
    %c0_43 = arith.constant 0 : index
    %c0_44 = arith.constant 0 : index
    %44 = vector.load %arg5[%c0_42, %c0_43, %c0_44] : memref<1x2x32xf32, #tpu.memory_space<vmem>>, vector<1x1x32xf32>
    tpu.vector_store %arg5[%c0_42, %c0_43, %c0_44], %43 {strides = array<i32>} : memref<1x2x32xf32, #tpu.memory_space<vmem>>, vector<1x1x32xf32>,
    %45 = arith.mulf %40, %40 : vector<8x32xf32>
    %cst_45 = arith.constant dense<0.000000e+00> : vector<32xf32>
    %46 = vector.multi_reduction <add>, %45, %cst_45 [0] : vector<8x32xf32> to vector<32xf32>
    %47 = vector.shape_cast %46 : vector<32xf32> to vector<1x32xf32>
    %48 = vector.shape_cast %47 : vector<1x32xf32> to vector<1x1x32xf32>
    %c0_46 = arith.constant 0 : index
    %c1_47 = arith.constant 1 : index
    %c0_48 = arith.constant 0 : index
    %49 = vector.load %arg5[%c0_46, %c1_47, %c0_48] : memref<1x2x32xf32, #tpu.memory_space<vmem>>, vector<1x1x32xf32>
    tpu.vector_store %arg5[%c0_46, %c1_47, %c0_48], %48 {strides = array<i32>} : memref<1x2x32xf32, #tpu.memory_space<vmem>>, vector<1x1x32xf32>,
    %50 = vector.shape_cast %40 : vector<8x32xf32> to vector<1x8x32xf32>
    %51 = arith.truncf %50 : vector<1x8x32xf32> to vector<1x8x32xbf16>
    %c0_49 = arith.constant 0 : index
    %c0_50 = arith.constant 0 : index
    %c0_51 = arith.constant 0 : index
    %52 = vector.load %arg4[%c0_49, %c0_50, %c0_51] : memref<1x8x32xbf16, #tpu.memory_space<vmem>>, vector<1x8x32xbf16>
    tpu.vector_store %arg4[%c0_49, %c0_50, %c0_51], %51 {strides = array<i32>} : memref<1x8x32xbf16, #tpu.memory_space<vmem>>, vector<1x8x32xbf16>,
    return
  }
  func.func @transform_0(%arg0: i32) -> (i32, i32, i32) {
    %c0_i32 = arith.constant 0 : i32
    %c0_i32_0 = arith.constant 0 : i32
    %c0_i32_1 = arith.constant 0 : i32
    return %arg0, %c0_i32, %c0_i32_0 : i32, i32, i32
  }
  func.func @transform_1(%arg0: i32) -> (i32, i32) {
    %c0_i32 = arith.constant 0 : i32
    %c0_i32_0 = arith.constant 0 : i32
    %c0_i32_1 = arith.constant 0 : i32
    return %c0_i32, %c0_i32_0 : i32, i32
  }
  func.func @transform_2(%arg0: i32) -> (i32, i32, i32) {
    %c0_i32 = arith.constant 0 : i32
    %c0_i32_0 = arith.constant 0 : i32
    %c0_i32_1 = arith.constant 0 : i32
    %c0_i32_2 = arith.constant 0 : i32
    return %c0_i32, %c0_i32_0, %c0_i32_1 : i32, i32, i32
  }
  func.func @transform_3(%arg0: i32) -> (i32, i32, i32) {
    %c0_i32 = arith.constant 0 : i32
    %c0_i32_0 = arith.constant 0 : i32
    %c0_i32_1 = arith.constant 0 : i32
    return %arg0, %c0_i32, %c0_i32_0 : i32, i32, i32
  }
  func.func @transform_4(%arg0: i32) -> (i32, i32, i32) {
    %c0_i32 = arith.constant 0 : i32
    %c0_i32_0 = arith.constant 0 : i32
    %c0_i32_1 = arith.constant 0 : i32
    return %arg0, %c0_i32, %c0_i32_0 : i32, i32, i32
  }
}

module attributes {stable_mosaic.version = 11 : i64} {
  func.func @_mid_kernel(%arg0: i32, %arg1: memref<1x4x32xbf16, #tpu.memory_space<vmem>>, %arg2: memref<2x32xf32, #tpu.memory_space<vmem>>, %arg3: memref<3x32x32xbf16, #tpu.memory_space<vmem>>, %arg4: memref<1x2x32xbf16, #tpu.memory_space<vmem>>, %arg5: memref<1x2x32xf32, #tpu.memory_space<vmem>>, %arg6: memref<4x32xf32, #tpu.memory_space<vmem>>, %arg7: memref<1x4x32xbf16, #tpu.memory_space<vmem>>) attributes {dimension_semantics = [#tpu.dimension_semantics<parallel>], iteration_bounds = array<i64: 2>, scalar_prefetch = 0 : i64, scratch_operands = 2 : i64, tpu.core_type = #tpu.core_type<tc>, window_params = [{transform_indices = @transform_0, window_bounds = array<i64: 1, 4, 32>}, {pipeline_mode = #tpu.pipeline_mode<synchronous>, transform_indices = @transform_1, window_bounds = array<i64: 2, 32>}, {pipeline_mode = #tpu.pipeline_mode<synchronous>, transform_indices = @transform_2, window_bounds = array<i64: 3, 32, 32>}, {transform_indices = @transform_3, window_bounds = array<i64: 1, 2, 32>}, {transform_indices = @transform_4, window_bounds = array<i64: 1, 2, 32>}]} {
    %c0 = arith.constant 0 : index
    %c0_0 = arith.constant 0 : index
    %c0_1 = arith.constant 0 : index
    %0 = vector.load %arg1[%c0, %c0_0, %c0_1] : memref<1x4x32xbf16, #tpu.memory_space<vmem>>, vector<1x4x32xbf16>
    %1 = arith.extf %0 : vector<1x4x32xbf16> to vector<1x4x32xf32>
    %c0_2 = arith.constant 0 : index
    %c0_3 = arith.constant 0 : index
    %2 = vector.load %arg2[%c0_2, %c0_3] : memref<2x32xf32, #tpu.memory_space<vmem>>, vector<1x32xf32>
    %3 = vector.shape_cast %2 : vector<1x32xf32> to vector<1x1x32xf32>
    %4 = vector.broadcast %3 : vector<1x1x32xf32> to vector<1x4x32xf32>
    %5 = arith.mulf %1, %4 : vector<1x4x32xf32>
    %c1 = arith.constant 1 : index
    %c0_4 = arith.constant 0 : index
    %6 = vector.load %arg2[%c1, %c0_4] : memref<2x32xf32, #tpu.memory_space<vmem>>, vector<1x32xf32>
    %7 = vector.shape_cast %6 : vector<1x32xf32> to vector<1x1x32xf32>
    %8 = vector.broadcast %7 : vector<1x1x32xf32> to vector<1x4x32xf32>
    %9 = arith.addf %5, %8 : vector<1x4x32xf32>
    %cst = arith.constant 0.000000e+00 : f32
    %10 = vector.broadcast %cst : f32 to vector<1x4x32xf32>
    %11 = arith.maximumf %9, %10 : vector<1x4x32xf32>
    %12 = vector.shape_cast %11 : vector<1x4x32xf32> to vector<4x32xf32>
    %c0_5 = arith.constant 0 : index
    %c0_6 = arith.constant 0 : index
    %13 = vector.load %arg6[%c0_5, %c0_6] : memref<4x32xf32, #tpu.memory_space<vmem>>, vector<4x32xf32>
    tpu.vector_store %arg6[%c0_5, %c0_6], %12 {strides = array<i32>} : memref<4x32xf32, #tpu.memory_space<vmem>>, vector<4x32xf32>,
    %c0_7 = arith.constant 0 : index
    %c0_8 = arith.constant 0 : index
    %14 = tpu.strided_load %arg6[%c0_7, %c0_8] {strides = array<i32: 2, 1>} : memref<4x32xf32, #tpu.memory_space<vmem>>, vector<2x32xf32>
    %c1_9 = arith.constant 1 : index
    %c0_10 = arith.constant 0 : index
    %15 = tpu.strided_load %arg6[%c1_9, %c0_10] {strides = array<i32: 2, 1>} : memref<4x32xf32, #tpu.memory_space<vmem>>, vector<2x32xf32>
    %16 = arith.maximumf %14, %15 : vector<2x32xf32>
    %cst_11 = arith.constant 0.000000e+00 : bf16
    %17 = vector.broadcast %cst_11 : bf16 to vector<1x1x32xbf16>
    %c0_12 = arith.constant 0 : index
    %c0_13 = arith.constant 0 : index
    %c0_14 = arith.constant 0 : index
    %18 = vector.load %arg7[%c0_12, %c0_13, %c0_14] : memref<1x4x32xbf16, #tpu.memory_space<vmem>>, vector<1x1x32xbf16>
    tpu.vector_store %arg7[%c0_12, %c0_13, %c0_14], %17 {strides = array<i32>} : memref<1x4x32xbf16, #tpu.memory_space<vmem>>, vector<1x1x32xbf16>,
    %cst_15 = arith.constant 0.000000e+00 : bf16
    %19 = vector.broadcast %cst_15 : bf16 to vector<1x1x32xbf16>
    %c0_16 = arith.constant 0 : index
    %c3 = arith.constant 3 : index
    %c0_17 = arith.constant 0 : index
    %20 = vector.load %arg7[%c0_16, %c3, %c0_17] : memref<1x4x32xbf16, #tpu.memory_space<vmem>>, vector<1x1x32xbf16>
    tpu.vector_store %arg7[%c0_16, %c3, %c0_17], %19 {strides = array<i32>} : memref<1x4x32xbf16, #tpu.memory_space<vmem>>, vector<1x1x32xbf16>,
    %21 = vector.shape_cast %16 : vector<2x32xf32> to vector<1x2x32xf32>
    %22 = arith.truncf %21 : vector<1x2x32xf32> to vector<1x2x32xbf16>
    %c0_18 = arith.constant 0 : index
    %c1_19 = arith.constant 1 : index
    %c0_20 = arith.constant 0 : index
    %23 = vector.load %arg7[%c0_18, %c1_19, %c0_20] : memref<1x4x32xbf16, #tpu.memory_space<vmem>>, vector<1x2x32xbf16>
    tpu.vector_store %arg7[%c0_18, %c1_19, %c0_20], %22 {strides = array<i32>} : memref<1x4x32xbf16, #tpu.memory_space<vmem>>, vector<1x2x32xbf16>,
    %c0_21 = arith.constant 0 : index
    %c0_22 = arith.constant 0 : index
    %c0_23 = arith.constant 0 : index
    %24 = vector.load %arg7[%c0_21, %c0_22, %c0_23] : memref<1x4x32xbf16, #tpu.memory_space<vmem>>, vector<1x2x32xbf16>
    %25 = vector.shape_cast %24 : vector<1x2x32xbf16> to vector<2x32xbf16>
    %c0_24 = arith.constant 0 : index
    %c0_25 = arith.constant 0 : index
    %c0_26 = arith.constant 0 : index
    %26 = vector.load %arg3[%c0_24, %c0_25, %c0_26] : memref<3x32x32xbf16, #tpu.memory_space<vmem>>, vector<1x32x32xbf16>
    %27 = vector.shape_cast %26 : vector<1x32x32xbf16> to vector<32x32xbf16>
    %cst_27 = arith.constant dense<0.000000e+00> : vector<2x32xf32>
    %28 = tpu.matmul %25, %27, %cst_27 {dimension_numbers = #tpu.dot_dimension_numbers<[1], [0], [0], [1], [0, 0, 1, 1], [], []>} : vector<2x32xbf16>, vector<32x32xbf16>, vector<2x32xf32> -> vector<2x32xf32>
    %c0_28 = arith.constant 0 : index
    %c1_29 = arith.constant 1 : index
    %c0_30 = arith.constant 0 : index
    %29 = vector.load %arg7[%c0_28, %c1_29, %c0_30] : memref<1x4x32xbf16, #tpu.memory_space<vmem>>, vector<1x2x32xbf16>
    %30 = vector.shape_cast %29 : vector<1x2x32xbf16> to vector<2x32xbf16>
    %c1_31 = arith.constant 1 : index
    %c0_32 = arith.constant 0 : index
    %c0_33 = arith.constant 0 : index
    %31 = vector.load %arg3[%c1_31, %c0_32, %c0_33] : memref<3x32x32xbf16, #tpu.memory_space<vmem>>, vector<1x32x32xbf16>
    %32 = vector.shape_cast %31 : vector<1x32x32xbf16> to vector<32x32xbf16>
    %cst_34 = arith.constant dense<0.000000e+00> : vector<2x32xf32>
    %33 = tpu.matmul %30, %32, %cst_34 {dimension_numbers = #tpu.dot_dimension_numbers<[1], [0], [0], [1], [0, 0, 1, 1], [], []>} : vector<2x32xbf16>, vector<32x32xbf16>, vector<2x32xf32> -> vector<2x32xf32>
    %34 = arith.addf %28, %33 : vector<2x32xf32>
    %c0_35 = arith.constant 0 : index
    %c2 = arith.constant 2 : index
    %c0_36 = arith.constant 0 : index
    %35 = vector.load %arg7[%c0_35, %c2, %c0_36] : memref<1x4x32xbf16, #tpu.memory_space<vmem>>, vector<1x2x32xbf16>
    %36 = vector.shape_cast %35 : vector<1x2x32xbf16> to vector<2x32xbf16>
    %c2_37 = arith.constant 2 : index
    %c0_38 = arith.constant 0 : index
    %c0_39 = arith.constant 0 : index
    %37 = vector.load %arg3[%c2_37, %c0_38, %c0_39] : memref<3x32x32xbf16, #tpu.memory_space<vmem>>, vector<1x32x32xbf16>
    %38 = vector.shape_cast %37 : vector<1x32x32xbf16> to vector<32x32xbf16>
    %cst_40 = arith.constant dense<0.000000e+00> : vector<2x32xf32>
    %39 = tpu.matmul %36, %38, %cst_40 {dimension_numbers = #tpu.dot_dimension_numbers<[1], [0], [0], [1], [0, 0, 1, 1], [], []>} : vector<2x32xbf16>, vector<32x32xbf16>, vector<2x32xf32> -> vector<2x32xf32>
    %40 = arith.addf %34, %39 : vector<2x32xf32>
    %cst_41 = arith.constant dense<0.000000e+00> : vector<32xf32>
    %41 = vector.multi_reduction <add>, %40, %cst_41 [0] : vector<2x32xf32> to vector<32xf32>
    %42 = vector.shape_cast %41 : vector<32xf32> to vector<1x32xf32>
    %43 = vector.shape_cast %42 : vector<1x32xf32> to vector<1x1x32xf32>
    %c0_42 = arith.constant 0 : index
    %c0_43 = arith.constant 0 : index
    %c0_44 = arith.constant 0 : index
    %44 = vector.load %arg5[%c0_42, %c0_43, %c0_44] : memref<1x2x32xf32, #tpu.memory_space<vmem>>, vector<1x1x32xf32>
    tpu.vector_store %arg5[%c0_42, %c0_43, %c0_44], %43 {strides = array<i32>} : memref<1x2x32xf32, #tpu.memory_space<vmem>>, vector<1x1x32xf32>,
    %45 = arith.mulf %40, %40 : vector<2x32xf32>
    %cst_45 = arith.constant dense<0.000000e+00> : vector<32xf32>
    %46 = vector.multi_reduction <add>, %45, %cst_45 [0] : vector<2x32xf32> to vector<32xf32>
    %47 = vector.shape_cast %46 : vector<32xf32> to vector<1x32xf32>
    %48 = vector.shape_cast %47 : vector<1x32xf32> to vector<1x1x32xf32>
    %c0_46 = arith.constant 0 : index
    %c1_47 = arith.constant 1 : index
    %c0_48 = arith.constant 0 : index
    %49 = vector.load %arg5[%c0_46, %c1_47, %c0_48] : memref<1x2x32xf32, #tpu.memory_space<vmem>>, vector<1x1x32xf32>
    tpu.vector_store %arg5[%c0_46, %c1_47, %c0_48], %48 {strides = array<i32>} : memref<1x2x32xf32, #tpu.memory_space<vmem>>, vector<1x1x32xf32>,
    %50 = vector.shape_cast %40 : vector<2x32xf32> to vector<1x2x32xf32>
    %51 = arith.truncf %50 : vector<1x2x32xf32> to vector<1x2x32xbf16>
    %c0_49 = arith.constant 0 : index
    %c0_50 = arith.constant 0 : index
    %c0_51 = arith.constant 0 : index
    %52 = vector.load %arg4[%c0_49, %c0_50, %c0_51] : memref<1x2x32xbf16, #tpu.memory_space<vmem>>, vector<1x2x32xbf16>
    tpu.vector_store %arg4[%c0_49, %c0_50, %c0_51], %51 {strides = array<i32>} : memref<1x2x32xbf16, #tpu.memory_space<vmem>>, vector<1x2x32xbf16>,
    return
  }
  func.func @transform_0(%arg0: i32) -> (i32, i32, i32) {
    %c0_i32 = arith.constant 0 : i32
    %c0_i32_0 = arith.constant 0 : i32
    %c0_i32_1 = arith.constant 0 : i32
    return %arg0, %c0_i32, %c0_i32_0 : i32, i32, i32
  }
  func.func @transform_1(%arg0: i32) -> (i32, i32) {
    %c0_i32 = arith.constant 0 : i32
    %c0_i32_0 = arith.constant 0 : i32
    %c0_i32_1 = arith.constant 0 : i32
    return %c0_i32, %c0_i32_0 : i32, i32
  }
  func.func @transform_2(%arg0: i32) -> (i32, i32, i32) {
    %c0_i32 = arith.constant 0 : i32
    %c0_i32_0 = arith.constant 0 : i32
    %c0_i32_1 = arith.constant 0 : i32
    %c0_i32_2 = arith.constant 0 : i32
    return %c0_i32, %c0_i32_0, %c0_i32_1 : i32, i32, i32
  }
  func.func @transform_3(%arg0: i32) -> (i32, i32, i32) {
    %c0_i32 = arith.constant 0 : i32
    %c0_i32_0 = arith.constant 0 : i32
    %c0_i32_1 = arith.constant 0 : i32
    return %arg0, %c0_i32, %c0_i32_0 : i32, i32, i32
  }
  func.func @transform_4(%arg0: i32) -> (i32, i32, i32) {
    %c0_i32 = arith.constant 0 : i32
    %c0_i32_0 = arith.constant 0 : i32
    %c0_i32_1 = arith.constant 0 : i32
    return %arg0, %c0_i32, %c0_i32_0 : i32, i32, i32
  }
}

module attributes {stable_mosaic.version = 11 : i64} {
  func.func @_mid_kernel(%arg0: i32, %arg1: memref<1x8x32xbf16, #tpu.memory_space<vmem>>, %arg2: memref<2x32xf32, #tpu.memory_space<vmem>>, %arg3: memref<3x32x32xbf16, #tpu.memory_space<vmem>>, %arg4: memref<1x4x32xbf16, #tpu.memory_space<vmem>>, %arg5: memref<1x2x32xf32, #tpu.memory_space<vmem>>, %arg6: memref<8x32xf32, #tpu.memory_space<vmem>>, %arg7: memref<1x6x32xbf16, #tpu.memory_space<vmem>>) attributes {dimension_semantics = [#tpu.dimension_semantics<parallel>], iteration_bounds = array<i64: 2>, scalar_prefetch = 0 : i64, scratch_operands = 2 : i64, tpu.core_type = #tpu.core_type<tc>, window_params = [{transform_indices = @transform_0, window_bounds = array<i64: 1, 8, 32>}, {pipeline_mode = #tpu.pipeline_mode<synchronous>, transform_indices = @transform_1, window_bounds = array<i64: 2, 32>}, {pipeline_mode = #tpu.pipeline_mode<synchronous>, transform_indices = @transform_2, window_bounds = array<i64: 3, 32, 32>}, {transform_indices = @transform_3, window_bounds = array<i64: 1, 4, 32>}, {transform_indices = @transform_4, window_bounds = array<i64: 1, 2, 32>}]} {
    %c0 = arith.constant 0 : index
    %c0_0 = arith.constant 0 : index
    %c0_1 = arith.constant 0 : index
    %0 = vector.load %arg1[%c0, %c0_0, %c0_1] : memref<1x8x32xbf16, #tpu.memory_space<vmem>>, vector<1x8x32xbf16>
    %1 = arith.extf %0 : vector<1x8x32xbf16> to vector<1x8x32xf32>
    %c0_2 = arith.constant 0 : index
    %c0_3 = arith.constant 0 : index
    %2 = vector.load %arg2[%c0_2, %c0_3] : memref<2x32xf32, #tpu.memory_space<vmem>>, vector<1x32xf32>
    %3 = vector.shape_cast %2 : vector<1x32xf32> to vector<1x1x32xf32>
    %4 = vector.broadcast %3 : vector<1x1x32xf32> to vector<1x8x32xf32>
    %5 = arith.mulf %1, %4 : vector<1x8x32xf32>
    %c1 = arith.constant 1 : index
    %c0_4 = arith.constant 0 : index
    %6 = vector.load %arg2[%c1, %c0_4] : memref<2x32xf32, #tpu.memory_space<vmem>>, vector<1x32xf32>
    %7 = vector.shape_cast %6 : vector<1x32xf32> to vector<1x1x32xf32>
    %8 = vector.broadcast %7 : vector<1x1x32xf32> to vector<1x8x32xf32>
    %9 = arith.addf %5, %8 : vector<1x8x32xf32>
    %cst = arith.constant 0.000000e+00 : f32
    %10 = vector.broadcast %cst : f32 to vector<1x8x32xf32>
    %11 = arith.maximumf %9, %10 : vector<1x8x32xf32>
    %12 = vector.shape_cast %11 : vector<1x8x32xf32> to vector<8x32xf32>
    %c0_5 = arith.constant 0 : index
    %c0_6 = arith.constant 0 : index
    %13 = vector.load %arg6[%c0_5, %c0_6] : memref<8x32xf32, #tpu.memory_space<vmem>>, vector<8x32xf32>
    tpu.vector_store %arg6[%c0_5, %c0_6], %12 {strides = array<i32>} : memref<8x32xf32, #tpu.memory_space<vmem>>, vector<8x32xf32>,
    %c0_7 = arith.constant 0 : index
    %c0_8 = arith.constant 0 : index
    %14 = tpu.strided_load %arg6[%c0_7, %c0_8] {strides = array<i32: 2, 1>} : memref<8x32xf32, #tpu.memory_space<vmem>>, vector<4x32xf32>
    %c1_9 = arith.constant 1 : index
    %c0_10 = arith.constant 0 : index
    %15 = tpu.strided_load %arg6[%c1_9, %c0_10] {strides = array<i32: 2, 1>} : memref<8x32xf32, #tpu.memory_space<vmem>>, vector<4x32xf32>
    %16 = arith.maximumf %14, %15 : vector<4x32xf32>
    %cst_11 = arith.constant 0.000000e+00 : bf16
    %17 = vector.broadcast %cst_11 : bf16 to vector<1x1x32xbf16>
    %c0_12 = arith.constant 0 : index
    %c0_13 = arith.constant 0 : index
    %c0_14 = arith.constant 0 : index
    %18 = vector.load %arg7[%c0_12, %c0_13, %c0_14] : memref<1x6x32xbf16, #tpu.memory_space<vmem>>, vector<1x1x32xbf16>
    tpu.vector_store %arg7[%c0_12, %c0_13, %c0_14], %17 {strides = array<i32>} : memref<1x6x32xbf16, #tpu.memory_space<vmem>>, vector<1x1x32xbf16>,
    %cst_15 = arith.constant 0.000000e+00 : bf16
    %19 = vector.broadcast %cst_15 : bf16 to vector<1x1x32xbf16>
    %c0_16 = arith.constant 0 : index
    %c5 = arith.constant 5 : index
    %c0_17 = arith.constant 0 : index
    %20 = vector.load %arg7[%c0_16, %c5, %c0_17] : memref<1x6x32xbf16, #tpu.memory_space<vmem>>, vector<1x1x32xbf16>
    tpu.vector_store %arg7[%c0_16, %c5, %c0_17], %19 {strides = array<i32>} : memref<1x6x32xbf16, #tpu.memory_space<vmem>>, vector<1x1x32xbf16>,
    %21 = vector.shape_cast %16 : vector<4x32xf32> to vector<1x4x32xf32>
    %22 = arith.truncf %21 : vector<1x4x32xf32> to vector<1x4x32xbf16>
    %c0_18 = arith.constant 0 : index
    %c1_19 = arith.constant 1 : index
    %c0_20 = arith.constant 0 : index
    %23 = vector.load %arg7[%c0_18, %c1_19, %c0_20] : memref<1x6x32xbf16, #tpu.memory_space<vmem>>, vector<1x4x32xbf16>
    tpu.vector_store %arg7[%c0_18, %c1_19, %c0_20], %22 {strides = array<i32>} : memref<1x6x32xbf16, #tpu.memory_space<vmem>>, vector<1x4x32xbf16>,
    %c0_21 = arith.constant 0 : index
    %c0_22 = arith.constant 0 : index
    %c0_23 = arith.constant 0 : index
    %24 = vector.load %arg7[%c0_21, %c0_22, %c0_23] : memref<1x6x32xbf16, #tpu.memory_space<vmem>>, vector<1x4x32xbf16>
    %25 = vector.shape_cast %24 : vector<1x4x32xbf16> to vector<4x32xbf16>
    %c0_24 = arith.constant 0 : index
    %c0_25 = arith.constant 0 : index
    %c0_26 = arith.constant 0 : index
    %26 = vector.load %arg3[%c0_24, %c0_25, %c0_26] : memref<3x32x32xbf16, #tpu.memory_space<vmem>>, vector<1x32x32xbf16>
    %27 = vector.shape_cast %26 : vector<1x32x32xbf16> to vector<32x32xbf16>
    %cst_27 = arith.constant dense<0.000000e+00> : vector<4x32xf32>
    %28 = tpu.matmul %25, %27, %cst_27 {dimension_numbers = #tpu.dot_dimension_numbers<[1], [0], [0], [1], [0, 0, 1, 1], [], []>} : vector<4x32xbf16>, vector<32x32xbf16>, vector<4x32xf32> -> vector<4x32xf32>
    %c0_28 = arith.constant 0 : index
    %c1_29 = arith.constant 1 : index
    %c0_30 = arith.constant 0 : index
    %29 = vector.load %arg7[%c0_28, %c1_29, %c0_30] : memref<1x6x32xbf16, #tpu.memory_space<vmem>>, vector<1x4x32xbf16>
    %30 = vector.shape_cast %29 : vector<1x4x32xbf16> to vector<4x32xbf16>
    %c1_31 = arith.constant 1 : index
    %c0_32 = arith.constant 0 : index
    %c0_33 = arith.constant 0 : index
    %31 = vector.load %arg3[%c1_31, %c0_32, %c0_33] : memref<3x32x32xbf16, #tpu.memory_space<vmem>>, vector<1x32x32xbf16>
    %32 = vector.shape_cast %31 : vector<1x32x32xbf16> to vector<32x32xbf16>
    %cst_34 = arith.constant dense<0.000000e+00> : vector<4x32xf32>
    %33 = tpu.matmul %30, %32, %cst_34 {dimension_numbers = #tpu.dot_dimension_numbers<[1], [0], [0], [1], [0, 0, 1, 1], [], []>} : vector<4x32xbf16>, vector<32x32xbf16>, vector<4x32xf32> -> vector<4x32xf32>
    %34 = arith.addf %28, %33 : vector<4x32xf32>
    %c0_35 = arith.constant 0 : index
    %c2 = arith.constant 2 : index
    %c0_36 = arith.constant 0 : index
    %35 = vector.load %arg7[%c0_35, %c2, %c0_36] : memref<1x6x32xbf16, #tpu.memory_space<vmem>>, vector<1x4x32xbf16>
    %36 = vector.shape_cast %35 : vector<1x4x32xbf16> to vector<4x32xbf16>
    %c2_37 = arith.constant 2 : index
    %c0_38 = arith.constant 0 : index
    %c0_39 = arith.constant 0 : index
    %37 = vector.load %arg3[%c2_37, %c0_38, %c0_39] : memref<3x32x32xbf16, #tpu.memory_space<vmem>>, vector<1x32x32xbf16>
    %38 = vector.shape_cast %37 : vector<1x32x32xbf16> to vector<32x32xbf16>
    %cst_40 = arith.constant dense<0.000000e+00> : vector<4x32xf32>
    %39 = tpu.matmul %36, %38, %cst_40 {dimension_numbers = #tpu.dot_dimension_numbers<[1], [0], [0], [1], [0, 0, 1, 1], [], []>} : vector<4x32xbf16>, vector<32x32xbf16>, vector<4x32xf32> -> vector<4x32xf32>
    %40 = arith.addf %34, %39 : vector<4x32xf32>
    %cst_41 = arith.constant dense<0.000000e+00> : vector<32xf32>
    %41 = vector.multi_reduction <add>, %40, %cst_41 [0] : vector<4x32xf32> to vector<32xf32>
    %42 = vector.shape_cast %41 : vector<32xf32> to vector<1x32xf32>
    %43 = vector.shape_cast %42 : vector<1x32xf32> to vector<1x1x32xf32>
    %c0_42 = arith.constant 0 : index
    %c0_43 = arith.constant 0 : index
    %c0_44 = arith.constant 0 : index
    %44 = vector.load %arg5[%c0_42, %c0_43, %c0_44] : memref<1x2x32xf32, #tpu.memory_space<vmem>>, vector<1x1x32xf32>
    tpu.vector_store %arg5[%c0_42, %c0_43, %c0_44], %43 {strides = array<i32>} : memref<1x2x32xf32, #tpu.memory_space<vmem>>, vector<1x1x32xf32>,
    %45 = arith.mulf %40, %40 : vector<4x32xf32>
    %cst_45 = arith.constant dense<0.000000e+00> : vector<32xf32>
    %46 = vector.multi_reduction <add>, %45, %cst_45 [0] : vector<4x32xf32> to vector<32xf32>
    %47 = vector.shape_cast %46 : vector<32xf32> to vector<1x32xf32>
    %48 = vector.shape_cast %47 : vector<1x32xf32> to vector<1x1x32xf32>
    %c0_46 = arith.constant 0 : index
    %c1_47 = arith.constant 1 : index
    %c0_48 = arith.constant 0 : index
    %49 = vector.load %arg5[%c0_46, %c1_47, %c0_48] : memref<1x2x32xf32, #tpu.memory_space<vmem>>, vector<1x1x32xf32>
    tpu.vector_store %arg5[%c0_46, %c1_47, %c0_48], %48 {strides = array<i32>} : memref<1x2x32xf32, #tpu.memory_space<vmem>>, vector<1x1x32xf32>,
    %50 = vector.shape_cast %40 : vector<4x32xf32> to vector<1x4x32xf32>
    %51 = arith.truncf %50 : vector<1x4x32xf32> to vector<1x4x32xbf16>
    %c0_49 = arith.constant 0 : index
    %c0_50 = arith.constant 0 : index
    %c0_51 = arith.constant 0 : index
    %52 = vector.load %arg4[%c0_49, %c0_50, %c0_51] : memref<1x4x32xbf16, #tpu.memory_space<vmem>>, vector<1x4x32xbf16>
    tpu.vector_store %arg4[%c0_49, %c0_50, %c0_51], %51 {strides = array<i32>} : memref<1x4x32xbf16, #tpu.memory_space<vmem>>, vector<1x4x32xbf16>,
    return
  }
  func.func @transform_0(%arg0: i32) -> (i32, i32, i32) {
    %c0_i32 = arith.constant 0 : i32
    %c0_i32_0 = arith.constant 0 : i32
    %c0_i32_1 = arith.constant 0 : i32
    return %arg0, %c0_i32, %c0_i32_0 : i32, i32, i32
  }
  func.func @transform_1(%arg0: i32) -> (i32, i32) {
    %c0_i32 = arith.constant 0 : i32
    %c0_i32_0 = arith.constant 0 : i32
    %c0_i32_1 = arith.constant 0 : i32
    return %c0_i32, %c0_i32_0 : i32, i32
  }
  func.func @transform_2(%arg0: i32) -> (i32, i32, i32) {
    %c0_i32 = arith.constant 0 : i32
    %c0_i32_0 = arith.constant 0 : i32
    %c0_i32_1 = arith.constant 0 : i32
    %c0_i32_2 = arith.constant 0 : i32
    return %c0_i32, %c0_i32_0, %c0_i32_1 : i32, i32, i32
  }
  func.func @transform_3(%arg0: i32) -> (i32, i32, i32) {
    %c0_i32 = arith.constant 0 : i32
    %c0_i32_0 = arith.constant 0 : i32
    %c0_i32_1 = arith.constant 0 : i32
    return %arg0, %c0_i32, %c0_i32_0 : i32, i32, i32
  }
  func.func @transform_4(%arg0: i32) -> (i32, i32, i32) {
    %c0_i32 = arith.constant 0 : i32
    %c0_i32_0 = arith.constant 0 : i32
    %c0_i32_1 = arith.constant 0 : i32
    return %arg0, %c0_i32, %c0_i32_0 : i32, i32, i32
  }
}

module attributes {stable_mosaic.version = 11 : i64} {
  func.func @_head_kernel(%arg0: i32, %arg1: memref<1x2x32xbf16, #tpu.memory_space<vmem>>, %arg2: memref<2x32xf32, #tpu.memory_space<vmem>>, %arg3: memref<1x1x32xf32, #tpu.memory_space<vmem>>, %arg4: memref<2x32xf32, #tpu.memory_space<vmem>>) attributes {dimension_semantics = [#tpu.dimension_semantics<parallel>], iteration_bounds = array<i64: 2>, scalar_prefetch = 0 : i64, scratch_operands = 1 : i64, tpu.core_type = #tpu.core_type<tc>, window_params = [{transform_indices = @transform_0, window_bounds = array<i64: 1, 2, 32>}, {pipeline_mode = #tpu.pipeline_mode<synchronous>, transform_indices = @transform_1, window_bounds = array<i64: 2, 32>}, {transform_indices = @transform_2, window_bounds = array<i64: 1, 1, 32>}]} {
    %c0 = arith.constant 0 : index
    %c0_0 = arith.constant 0 : index
    %c0_1 = arith.constant 0 : index
    %0 = vector.load %arg1[%c0, %c0_0, %c0_1] : memref<1x2x32xbf16, #tpu.memory_space<vmem>>, vector<1x2x32xbf16>
    %1 = arith.extf %0 : vector<1x2x32xbf16> to vector<1x2x32xf32>
    %c0_2 = arith.constant 0 : index
    %c0_3 = arith.constant 0 : index
    %2 = vector.load %arg2[%c0_2, %c0_3] : memref<2x32xf32, #tpu.memory_space<vmem>>, vector<1x32xf32>
    %3 = vector.shape_cast %2 : vector<1x32xf32> to vector<1x1x32xf32>
    %4 = vector.broadcast %3 : vector<1x1x32xf32> to vector<1x2x32xf32>
    %5 = arith.mulf %1, %4 : vector<1x2x32xf32>
    %c1 = arith.constant 1 : index
    %c0_4 = arith.constant 0 : index
    %6 = vector.load %arg2[%c1, %c0_4] : memref<2x32xf32, #tpu.memory_space<vmem>>, vector<1x32xf32>
    %7 = vector.shape_cast %6 : vector<1x32xf32> to vector<1x1x32xf32>
    %8 = vector.broadcast %7 : vector<1x1x32xf32> to vector<1x2x32xf32>
    %9 = arith.addf %5, %8 : vector<1x2x32xf32>
    %cst = arith.constant 0.000000e+00 : f32
    %10 = vector.broadcast %cst : f32 to vector<1x2x32xf32>
    %11 = arith.maximumf %9, %10 : vector<1x2x32xf32>
    %12 = vector.shape_cast %11 : vector<1x2x32xf32> to vector<2x32xf32>
    %c0_5 = arith.constant 0 : index
    %c0_6 = arith.constant 0 : index
    %13 = vector.load %arg4[%c0_5, %c0_6] : memref<2x32xf32, #tpu.memory_space<vmem>>, vector<2x32xf32>
    tpu.vector_store %arg4[%c0_5, %c0_6], %12 {strides = array<i32>} : memref<2x32xf32, #tpu.memory_space<vmem>>, vector<2x32xf32>,
    %c0_7 = arith.constant 0 : index
    %c0_8 = arith.constant 0 : index
    %14 = tpu.strided_load %arg4[%c0_7, %c0_8] {strides = array<i32: 2, 1>} : memref<2x32xf32, #tpu.memory_space<vmem>>, vector<1x32xf32>
    %c1_9 = arith.constant 1 : index
    %c0_10 = arith.constant 0 : index
    %15 = tpu.strided_load %arg4[%c1_9, %c0_10] {strides = array<i32: 2, 1>} : memref<2x32xf32, #tpu.memory_space<vmem>>, vector<1x32xf32>
    %16 = arith.maximumf %14, %15 : vector<1x32xf32>
    %17 = vector.shape_cast %16 : vector<1x32xf32> to vector<1x1x32xf32>
    %c0_11 = arith.constant 0 : index
    %c0_12 = arith.constant 0 : index
    %c0_13 = arith.constant 0 : index
    %18 = vector.load %arg3[%c0_11, %c0_12, %c0_13] : memref<1x1x32xf32, #tpu.memory_space<vmem>>, vector<1x1x32xf32>
    tpu.vector_store %arg3[%c0_11, %c0_12, %c0_13], %17 {strides = array<i32>} : memref<1x1x32xf32, #tpu.memory_space<vmem>>, vector<1x1x32xf32>,
    return
  }
  func.func @transform_0(%arg0: i32) -> (i32, i32, i32) {
    %c0_i32 = arith.constant 0 : i32
    %c0_i32_0 = arith.constant 0 : i32
    %c0_i32_1 = arith.constant 0 : i32
    return %arg0, %c0_i32, %c0_i32_0 : i32, i32, i32
  }
  func.func @transform_1(%arg0: i32) -> (i32, i32) {
    %c0_i32 = arith.constant 0 : i32
    %c0_i32_0 = arith.constant 0 : i32
    %c0_i32_1 = arith.constant 0 : i32
    return %c0_i32, %c0_i32_0 : i32, i32
  }
  func.func @transform_2(%arg0: i32) -> (i32, i32, i32) {
    %c0_i32 = arith.constant 0 : i32
    %c0_i32_0 = arith.constant 0 : i32
    %c0_i32_1 = arith.constant 0 : i32
    return %arg0, %c0_i32, %c0_i32_0 : i32, i32, i32
  }
}

</mosaic_0001>

<bundles_post_ra>
// kernel: net4cnn_forward.5
= control target key start
LH: loop header
LB: loop body
LE: loop exit
PB: predicated region body
PF: predicated region fallthrough
CT: control target
= control target key end

     0   :  { %s659_s12 = smov 0   ;;  %s718_s0 = inlined_call_operand.vmem [shape: f32[2,4,16], index: 0, kind: input, shape index: {}]   ;;  %s719_s1 = inlined_call_operand.vmem [shape: bf16[3,4,32], index: 1, kind: input, shape index: {}]   ;;  %s720_s2 = inlined_call_operand.vmem [shape: bf16[2,16,32], index: 2, kind: output, shape index: {0}]   ;;  %s721_s3 = inlined_call_operand.vmem [shape: f32[2,2,32], index: 3, kind: output, shape index: {1}]  }
   0x1 LB: > { %s564_s13 = sadd.s32 4294967295, %s635_s12   ;;  %p568_p0 = scmp.ge.s32.totalorder %s635_s12, 1  ;;  %s635_s12 = sphi %s659_s12, %s14_s12  }
   0x2   : > { %p139_p1 = scmp.lt.s32.totalorder %s635_s12, 3 }
   0x4   : > { %p140_p2 = pnand %p568_p0, %p139_p1 }
   0x5   : > { %p166_p3 = scmp.lt.s32.totalorder (!%p140_p2), %s564_s13, 1 }
   0x6   : > { %143 = sbr.rel (%p140_p2) target bundleno = 395 (0x18b), region = 28 }
   0xb   : > { %vm214_vm0 = vcmask 24576   ;;  %vm215_vm1 = vsmask.f32 256  ;;  %v217_v0 = vld [vmem:[#allocation2] sm:$0x1]  ;;  %s725_s13 = smov (!%p166_p3, %s564_s13), 1 }
   0xc   : > { %vm668_vm2 = vmand %vm214_vm0, %vm215_vm1  ;;  %vm220_vm3 = vsmask.f32 7938  ;;  %v222_v2 = vld [vmem:[#allocation2 + $0x8] sm:$0x1]  ;;  %s569_s14 = sshll.u32 %s725_s13, 2  ;;  %vm293_vm5 = vcmask 1041408  }
   0xd   : > { %v218_v3 = vsel %vm668_vm2, 0, %v217_v0  ;;  %vm221_vm4 = vmand %vm214_vm0, %vm220_vm3  ;;  %s169_s17 = scalar_lea.vmem %s718_s0, %s569_s14  ;;  %v264_v6 = vld [vmem:[%s719_s1] sm:$0x3]  ;;  %v637_v7 = vmov 0.0   ;;  %vm638_vm6 = vmmov 0   ;;  %vm252_vm7 = vcmask 27648  }
   0xe   : > { %219 = vst [vmem:[#allocation2] sm:$0x1] %v218_v3  ;;  %v223_v4 = vsel %vm221_vm4, 0, %v222_v2  ;;  %v180_v5 = vld [vmem:[%s169_s17] sm:$0xf]  ;;  %604 = vmatprep.subr.bf16.mxu1 %v637_v7  ;;  %v341_v8 = vsel %vm293_vm5, %v264_v6, 0  ;;  %606 = vmatprep.mubr.msk.bf16.mxu1 %vm638_vm6, %v637_v7  ;;  %vm253_vm8 = vmand %vm252_vm7, %vm220_vm3 }
   0xf   : > { %224 = vst [vmem:[#allocation2 + $0x8] sm:$0x1] %v223_v4  ;;  %181 = vxpose.xlu0.b32.start.end [1/1] (short) (narrow) %v180_v5, 16  ;;  %605 = vmatpush3.bf16.msra.mxu1 %v341_v8  ;;  %v575_v9 = vld [vmem:[%s719_s1 + $0x2] sm:$0x3]  ;;  %vm289_vm11 = vcmask 31744  }
  0x10   : > { %598 = vmatprep.subr.bf16.mxu0 %v637_v7  ;;  %600 = vmatprep.mubr.msk.bf16.mxu0 %vm638_vm6, %v637_v7  ;;  %v295_v10 = vsel %vm293_vm5, %v575_v9, 0  ;;  %vm230_vm9 = vsmask.f32 4368  ;;  %v580_v38 = vld [vmem:[%s719_s1 + $0x4] sm:$0x3]  ;;  %vm390_vm13 = vcmask 1046528  }
  0x11   : > { %599 = vmatpush3.bf16.msra.mxu0 %v295_v10  ;;  %vm231_vm10 = vmor %vm215_vm1, %vm230_vm9  ;;  %vm276_vm12 = vsmask.f32 7424  ;;  %v398_v42 = vsel %vm293_vm5, %v580_v38, 0  ;;  %s587_s24 = sshll.u32 %s725_s13, 3  ;;  %vm475_vm14 = vcmask 257024   ;;  %vm443_vm15 = vcmask 261120  }
  0x12   : > { %610 = vmatprep.subr.bf16.mxu0 %v637_v7  ;;  %s174_s27 = scalar_lea.vmem %s720_s2, %s587_s24  ;;  %s572_s28 = sshll.u32 %s725_s13, 1  ;;  %vm453_vm0 = vcmask 253952  }
  0x13   : > { %s178_s4 = scalar_lea.vmem %s721_s3, %s572_s28 }
  0x15   : > { %v254_v18 = vld [vmem:[#allocation2] sm:$0xf] }
  0x16   : > { %v259_v24 = vld [vmem:[#allocation2 + $0x8] sm:$0x1] }
  0x8b   : > { %v197_v11 = vpop.trf.xlu0 }
  0x8c   : > { %v588_v12 = vpack.c.bf16 %v197_v11, %v197_v11 }
  0x8e   : > { %v233_v13 = vshrl.u32 %v588_v12, 16  ;;  %v236_v16 = vshll.u32 %v588_v12, 16 }
  0x8f   : > { %v198_v14 = vpop.trf.xlu0 }
  0x90   : > { %v235_v15 = vrot.slane %v233_v13, 7  ;;  %v589_v17 = vpack.c.bf16 %v198_v14, %v198_v14 }
  0x92   : > { %v238_v19 = vor.u32 %v236_v16, %v235_v15  ;;  %v241_v20 = vshrl.u32 %v589_v17, 16  ;;  %v244_v23 = vshll.u32 %v589_v17, 16  ;;  %v239_v25 = vrot.slane %v235_v15, 4 }
  0x94   : > { %v255_v21 = vsel %vm253_vm8, %v238_v19, %v254_v18  ;;  %v243_v22 = vrot.slane %v241_v20, 7 }
  0x95   : > { %256 = vst [vmem:[#allocation2] sm:$0xf] %v255_v21 }
  0x96   : > { %v246_v26 = vor.u32 %v244_v23, %v243_v22  ;;  %v248_v27 = vrot.slane %v243_v22, 4 }
  0x98   : > { %v247_v28 = vsel %vm231_vm10, %v239_v25, %v246_v26  ;;  %v260_v29 = vsel %vm668_vm2, %v248_v27, %v259_v24 }
  0x99   : > { %258 = vst.msk [vmem:[#allocation2 + $0x4] sm:$0xf] %vm252_vm7, %v247_v28  ;;  %261 = vst [vmem:[#allocation2 + $0x8] sm:$0x1] %v260_v29 }
  0x9c   : > { %v262_v30 = vld [vmem:[#allocation2] sm:$0xf] }
  0x9d   : > { %v384_v41 = vld [vmem:[#allocation2] sm:$0xe] }
  0xa0   : > { %v263_v31 = vld [vmem:[#allocation2 + $0x4] sm:$0xf]  ;;  %v628_v33 = vld [vmem:[#allocation2 + $0x8] ss:$0 sps:$4 sm:$0x11]  }
  0xa1   : > { %v576_v32 = vcombine.low %v262_v30, %v263_v31  ;;  %v285_v35 = vshll.u32 %v628_v33, 16  ;;  %v581_v43 = vcombine.low %v384_v41, %v263_v31  ;;  %v392_v46 = vrot.slane %v628_v33, 1 }
  0xa3   : > { %607 = vmatmul.mubr.msk.bf16.vlgmr.msra.gmra.mxu1 %vm289_vm11, %v576_v32  ;;  %v280_v34 = vshll.u32 %v576_v32, 16  ;;  %v278_v36 = vshrl.u32 %v576_v32, 16  ;;  %v287_v40 = vrot.slane %v285_v35, 1  ;;  %v391_v45 = vrot.slane %v581_v43, 1 }
  0xa5   : > { %v282_v37 = vrot.slane %v280_v34, 1  ;;  %v393_v47 = vsel %vm390_vm13, %v391_v45, %v392_v46 }
  0xa7   : > { %v283_v39 = vor.u32 %v282_v37, %v278_v36 }
  0xa9   : > { %v288_v44 = vsel %vm276_vm12, %v283_v39, %v287_v40 }
  0xaa   : > { %601 = vmatmul.mubr.msk.bf16.vlgmr.msra.gmra.mxu0 %vm289_vm11, %v288_v44 }
  0xab   : > { %611 = vmatpush3.bf16.msra.mxu0 %v398_v42  ;;  %612 = vmatprep.mubr.msk.bf16.mxu0 %vm638_vm6, %v637_v7 }
  0xb2   : > { %613 = vmatmul.mubr.msk.bf16.vlgmr.msra.gmra.mxu0 %vm289_vm11, %v393_v47 }
 0x163   : > { %v377_v48 = vpop.f32.mrf.mxu1 }
 0x165   : > { %v608_v49 = vpop.f32.mrf.mxu1 }
 0x167   : > { %v380_v50 = vpop.f32.mrf.mxu1 }
 0x169   : > { %v609_v51 = vpop.f32.mrf.mxu1 }
 0x16a   : > { %v331_v52 = vpop.f32.mrf.mxu0 }
 0x16b   : > { %v378_v56 = vadd.f32 %v377_v48, %v331_v52 }
 0x16c   : > { %v602_v53 = vpop.f32.mrf.mxu0 }
 0x16e   : > { %v334_v54 = vpop.f32.mrf.mxu0 }
 0x16f   : > { %v381_v60 = vadd.f32 %v380_v50, %v334_v54 }
 0x170   : > { %v603_v55 = vpop.f32.mrf.mxu0 }
 0x172   : > { %v434_v57 = vpop.f32.mrf.mxu0 }
 0x173   : > { %v441_v58 = vadd.f32 %v434_v57, %v378_v56 }
 0x174   : > { %v614_v59 = vpop.f32.mrf.mxu0 }
 0x175   : > { %v590_v61 = vpack.c.bf16 %v441_v58, %v441_v58  ;;  %v455_v63 = vmul.f32 %v441_v58, %v441_v58  ;;  %v444_v2 = vsel %vm443_vm15, %v441_v58, 0.0 }
 0x176   : > { %v437_v62 = vpop.f32.mrf.mxu0 }
 0x177   : > { %476 = vst.msk [vmem:[%s174_s27] sm:$0xf] %vm475_vm14, %v590_v61  ;;  %v442_v0 = vadd.f32 %v437_v62, %v381_v60  ;;  %v457_v7 = vsel %vm443_vm15, %v455_v63, 0.0 }
 0x178   : > { %v615_v1 = vpop.f32.mrf.mxu0 }
 0x179   : > { %v445_v3 = vsel %vm443_vm15, %v442_v0, 0.0  ;;  %v456_v4 = vmul.f32 %v442_v0, %v442_v0  ;;  %v591_v5 = vpack.c.bf16 %v442_v0, %v442_v0 }
 0x17a   : > { %v446_v6 = vadd.f32 %v445_v3, %v444_v2 }
 0x17b   : > { %v458_v8 = vsel %vm443_vm15, %v456_v4, 0.0  ;;  %477 = vst.msk [vmem:[%s174_s27 + $0x4] sm:$0xf] %vm475_vm14, %v591_v5 }
 0x17c   : > { %v447_v9 = vrot.slane %v446_v6, 4  ;;  %v459_v10 = vadd.f32 %v458_v8, %v457_v7 }
 0x17e   : > { %v448_v11 = vadd.f32 %v447_v9, %v446_v6  ;;  %v460_v12 = vrot.slane %v459_v10, 4 }
 0x180   : > { %v449_v13 = vrot.slane %v448_v11, 2  ;;  %v461_v14 = vadd.f32 %v460_v12, %v459_v10 }
 0x182   : > { %v450_v15 = vadd.f32 %v449_v13, %v448_v11  ;;  %v462_v16 = vrot.slane %v461_v14, 2 }
 0x184   : > { %v451_v17 = vrot.slane %v450_v15, 1  ;;  %v463_v18 = vadd.f32 %v462_v16, %v461_v14 }
 0x186   : > { %v452_v19 = vadd.f32 %v451_v17, %v450_v15  ;;  %v464_v20 = vrot.slane %v463_v18, 1 }
 0x188   : > { %454 = vst.msk [vmem:[%s178_s4] sm:$0x1] %vm453_vm0, %v452_v19  ;;  %v465_v21 = vadd.f32 %v464_v20, %v463_v18 }
 0x18a   : > { %466 = vst.msk [vmem:[%s178_s4 + $0x1] sm:$0x1] %vm453_vm0, %v465_v21 }
 0x18b PF: > { %s14_s12 = sadd.s32 1, %s635_s12  }
 0x18c   : > { %p11_p4 = scmp.ge.s32.totalorder %s14_s12, 4  }
 0x18e   :  { %13 = sbr.rel (!%p11_p4) target bundleno = 1 (0x1), region = 72 }

// kernel: net4cnn_forward.6
= control target key start
LH: loop header
LB: loop body
LE: loop exit
PB: predicated region body
PF: predicated region fallthrough
CT: control target
= control target key end

     0   :  { %s697_s15 = smov 0   ;;  %s781_s0 = inlined_call_operand.vmem [shape: bf16[2,16,32], index: 0, kind: input, shape index: {}]   ;;  %s782_s1 = inlined_call_operand.vmem [shape: f32[2,32], index: 1, kind: input, shape index: {}]   ;;  %s783_s2 = inlined_call_operand.vmem [shape: bf16[3,32,32], index: 2, kind: input, shape index: {}]   ;;  %s784_s3 = inlined_call_operand.vmem [shape: bf16[2,8,32], index: 3, kind: output, shape index: {0}]   ;;  %s785_s4 = inlined_call_operand.vmem [shape: f32[2,2,32], index: 4, kind: output, shape index: {1}]  }
   0x1 LB: > { %s572_s16 = sadd.s32 4294967295, %s668_s15   ;;  %p576_p0 = scmp.ge.s32.totalorder %s668_s15, 1  ;;  %s668_s15 = sphi %s697_s15, %s15_s15  }
   0x2   : > { %p165_p1 = scmp.lt.s32.totalorder %s668_s15, 3 }
   0x4   : > { %p166_p2 = pnand %p576_p0, %p165_p1 }
   0x5   : > { %p194_p3 = scmp.lt.s32.totalorder (!%p166_p2), %s572_s16, 1 }
   0x6   : > { %169 = sbr.rel (%p166_p2) target bundleno = 278 (0x116), region = 32 }
   0xb   : > { %v654_v0 = vld [vmem:[%s783_s2 + $0x18] sm:$0xff]   ;;  %v670_v1 = vmov 0.0   ;;  %v655_v2 = vld [vmem:[%s783_s2 + $0x8] sm:$0xff]   ;;  %v656_v3 = vld [vmem:[%s783_s2 + $0x10] sm:$0xff]   ;;  %vm671_vm0 = vmmov 0   ;;  %s789_s16 = smov (!%p194_p3, %s572_s16), 1 }
   0xc   : > { %620 = vmatprep.subr.bf16.mxu0 %v670_v1  ;;  %628 = vmatprep.subr.bf16.mxu1 %v670_v1  ;;  %v657_v4 = vld [vmem:[%s783_s2] sm:$0xff]   ;;  %vm235_vm1 = vcmask 253952   ;;  %vm236_vm2 = vsmask.f32 256  ;;  %v238_v5 = vld [vmem:[#allocation3] sm:$0x1] }
   0xd   : > { %621 = vmatpush3.bf16.msra.mxu0 %v654_v0  ;;  %624 = vmatprep.mubr.msk.bf16.mxu0 %vm671_vm0, %v670_v1  ;;  %vm241_vm3 = vsmask.f32 7938  ;;  %s605_s25 = sshll.u32 %s789_s16, 3  ;;  %vm729_vm4 = vmand %vm235_vm1, %vm236_vm2  ;;  %v243_v7 = vld [vmem:[#allocation3 + $0x4] sm:$0x1]  ;;  %vm228_vm6 = vcmask 261120  }
   0xe   : > { %629 = vmatpush3.bf16.msra.mxu1 %v655_v2  ;;  %622 = vmatprep.subr.bf16.mxu0 %v670_v1  ;;  %s198_s28 = scalar_lea.vmem %s781_s0, %s605_s25  ;;  %v239_v8 = vsel %vm729_vm4, 0, %v238_v5  ;;  %vm242_vm5 = vmand %vm235_vm1, %vm241_vm3  ;;  %v581_v10 = vld [vmem:[%s782_s1] ss:$0 sm:$0xff]  ;;  %v582_v14 = vld [vmem:[%s782_s1 + $0x1] ss:$0 sm:$0xff]  ;;  %vm260_vm7 = vcmask 257024  }
   0xf   : > { %630 = vmatprep.subr.bf16.mxu1 %v670_v1  ;;  %632 = vmatprep.mubr.msk.bf16.mxu1 %vm671_vm0, %v670_v1  ;;  %v608_v9 = vld [vmem:[%s198_s28] sm:$0xff]   ;;  %240 = vst [vmem:[#allocation3] sm:$0x1] %v239_v8  ;;  %v244_v11 = vsel %vm242_vm5, 0, %v243_v7  ;;  %vm261_vm8 = vmand %vm260_vm7, %vm241_vm3  ;;  %v659_v40 = vld [vmem:[%s783_s2 + $0x28] sm:$0xff]   ;;  %s579_s11 = sshll.u32 %s789_s16, 2 }
  0x10   : > { %v609_v12 = vunpack.c.l.bf16 %v608_v9  ;;  %v610_v13 = vunpack.c.h.bf16 %v608_v9  ;;  %245 = vst [vmem:[#allocation3 + $0x4] sm:$0x1] %v244_v11  ;;  %v660_v44 = vld [vmem:[%s783_s2 + $0x20] sm:$0xff]   ;;  %s202_s14 = scalar_lea.vmem %s784_s3, %s579_s11  ;;  %s580_s17 = sshll.u32 %s789_s16, 1 }
  0x11   : > { %623 = vmatpush3.bf16.msra.mxu0 %v656_v3  ;;  %s206_s20 = scalar_lea.vmem %s785_s4, %s580_s17 }
  0x12   : > { %631 = vmatpush3.bf16.msra.mxu1 %v657_v4  ;;  %636 = vmatprep.subr.bf16.mxu0 %v670_v1  ;;  %v217_v15 = vmul.f32 %v609_v12, %v581_v10  ;;  %v218_v16 = vmul.f32 %v610_v13, %v581_v10 }
  0x14   : > { %v224_v17 = vadd.f32 %v582_v14, %v217_v15  ;;  %v225_v18 = vadd.f32 %v582_v14, %v218_v16 }
  0x16   : > { %v226_v19 = vmax.f32 %v224_v17, 0.0  ;;  %v227_v20 = vmax.f32 %v225_v18, 0.0  ;;  %v262_v28 = vld [vmem:[#allocation3] sm:$0xf] }
  0x17   : > { %v265_v29 = vld [vmem:[#allocation3 + $0x4] sm:$0x1] }
  0x18   : > { %229 = vst.msk [vmem:[#allocation2] sm:$0xff] %vm228_vm6, %v226_v19  ;;  %230 = vst.msk [vmem:[#allocation2 + $0x8] sm:$0xff] %vm228_vm6, %v227_v20 }
  0x1f   : > { %v231_v21 = vld [vmem:[#allocation2] ss:$2 sm:$0xff]  ;;  %v233_v22 = vld [vmem:[#allocation2 + $0x1] ss:$2 sm:$0xff] }
  0x20   : > { %v234_v23 = vmax.f32 %v231_v21, %v233_v22 }
  0x22   : > { %v606_v24 = vpack.c.bf16 %v234_v23, %v234_v23 }
  0x24   : > { %v251_v25 = vshrl.u32 %v606_v24, 16  ;;  %v254_v26 = vshll.u32 %v606_v24, 16 }
  0x26   : > { %v253_v27 = vrot.slane %v251_v25, 7 }
  0x28   : > { %v256_v30 = vor.u32 %v254_v26, %v253_v27  ;;  %v257_v31 = vrot.slane %v253_v27, 4 }
  0x2a   : > { %v263_v32 = vsel %vm261_vm8, %v256_v30, %v262_v28  ;;  %v266_v33 = vsel %vm729_vm4, %v257_v31, %v265_v29 }
  0x2b   : > { %264 = vst [vmem:[#allocation3] sm:$0xf] %v263_v32  ;;  %267 = vst [vmem:[#allocation3 + $0x4] sm:$0x1] %v266_v33 }
  0x32   : > { %v268_v34 = vld [vmem:[#allocation3] sm:$0xf]  ;;  %v273_v35 = vld [vmem:[#allocation3 + $0x4] sm:$0x1] }
  0x33   : > { %v588_v36 = vcombine.low %v268_v34, %v273_v35  ;;  %633 = vmatmul.mubr.msk.bf16.vlgmr.msra.gmra.mxu1 %vm228_vm6, %v268_v34  ;;  %v401_v41 = vld [vmem:[#allocation3] sm:$0xe] }
  0x34   : > { %v599_v43 = vcombine.low %v401_v41, %v273_v35 }
  0x35   : > { %v285_v37 = vshrl.u32 %v588_v36, 16  ;;  %v287_v38 = vshll.u32 %v588_v36, 16 }
  0x36   : > { %v410_v45 = vrot.slane %v599_v43, 1 }
  0x37   : > { %v289_v39 = vrot.slane %v287_v38, 1 }
  0x39   : > { %v290_v42 = vor.u32 %v289_v39, %v285_v37 }
  0x3b   : > { %625 = vmatmul.mubr.msk.bf16.vlgmr.msra.gmra.mxu0 %vm228_vm6, %v290_v42 }
  0x3c   : > { %637 = vmatpush3.bf16.msra.mxu0 %v659_v40  ;;  %640 = vmatprep.mubr.msk.bf16.mxu0 %vm671_vm0, %v670_v1 }
  0x3d   : > { %638 = vmatprep.subr.bf16.mxu0 %v670_v1 }
  0x40   : > { %639 = vmatpush3.bf16.msra.mxu0 %v660_v44 }
  0x43   : > { %641 = vmatmul.mubr.msk.bf16.vlgmr.msra.gmra.mxu0 %vm228_vm6, %v410_v45 }
  0xf3   : > { %v395_v46 = vpop.f32.mrf.mxu1 }
  0xf5   : > { %v634_v47 = vpop.f32.mrf.mxu1 }
  0xf7   : > { %v398_v48 = vpop.f32.mrf.mxu1 }
  0xf9   : > { %v635_v49 = vpop.f32.mrf.mxu1 }
  0xfb   : > { %v340_v50 = vpop.f32.mrf.mxu0 }
  0xfc   : > { %v396_v54 = vadd.f32 %v395_v46, %v340_v50 }
  0xfd   : > { %v626_v51 = vpop.f32.mrf.mxu0 }
  0xff   : > { %v343_v52 = vpop.f32.mrf.mxu0 }
 0x101   : > { %v627_v53 = vpop.f32.mrf.mxu0 }
 0x103   : > { %v460_v55 = vpop.f32.mrf.mxu0 }
 0x104   : > { %v466_v56 = vadd.f32 %v460_v55, %v396_v54 }
 0x105   : > { %v642_v57 = vpop.f32.mrf.mxu0 }
 0x106   : > { %v467_v58 = vsel %vm228_vm6, %v466_v56, 0.0  ;;  %v476_v59 = vmul.f32 %v466_v56, %v466_v56  ;;  %v485_v60 = vpack.c.bf16 %v466_v56, %v466_v56 }
 0x107   : > { %v468_v61 = vrot.slane %v467_v58, 4  ;;  %v463_v62 = vpop.f32.mrf.mxu0 }
 0x108   : > { %v477_v63 = vsel %vm228_vm6, %v476_v59, 0.0  ;;  %487 = vst.msk [vmem:[%s202_s14] sm:$0xf] %vm260_vm7, %v485_v60 }
 0x109   : > { %v469_v0 = vadd.f32 %v468_v61, %v467_v58  ;;  %v478_v1 = vrot.slane %v477_v63, 4  ;;  %v643_v2 = vpop.f32.mrf.mxu0 }
 0x10b   : > { %v470_v3 = vrot.slane %v469_v0, 2  ;;  %v479_v4 = vadd.f32 %v478_v1, %v477_v63 }
 0x10d   : > { %v471_v5 = vadd.f32 %v470_v3, %v469_v0  ;;  %v480_v6 = vrot.slane %v479_v4, 2 }
 0x10f   : > { %v472_v7 = vrot.slane %v471_v5, 1  ;;  %v481_v8 = vadd.f32 %v480_v6, %v479_v4 }
 0x111   : > { %v473_v9 = vadd.f32 %v472_v7, %v471_v5  ;;  %v482_v10 = vrot.slane %v481_v8, 1 }
 0x113   : > { %475 = vst.msk [vmem:[%s206_s20] sm:$0x1] %vm235_vm1, %v473_v9  ;;  %v483_v11 = vadd.f32 %v482_v10, %v481_v8 }
 0x115   : > { %484 = vst.msk [vmem:[%s206_s20 + $0x1] sm:$0x1] %vm235_vm1, %v483_v11 }
 0x116 PF: > { %s15_s15 = sadd.s32 1, %s668_s15  }
 0x117   : > { %p12_p4 = scmp.ge.s32.totalorder %s15_s15, 4  }
 0x119   :  { %14 = sbr.rel (!%p12_p4) target bundleno = 1 (0x1), region = 77 }

// kernel: net4cnn_forward.7
= control target key start
LH: loop header
LB: loop body
LE: loop exit
PB: predicated region body
PF: predicated region fallthrough
CT: control target
= control target key end

     0   :  { %s678_s15 = smov 0   ;;  %s745_s0 = inlined_call_operand.vmem [shape: bf16[2,8,32], index: 0, kind: input, shape index: {}]   ;;  %s746_s1 = inlined_call_operand.vmem [shape: f32[2,32], index: 1, kind: input, shape index: {}]   ;;  %s747_s2 = inlined_call_operand.vmem [shape: bf16[3,32,32], index: 2, kind: input, shape index: {}]   ;;  %s748_s3 = inlined_call_operand.vmem [shape: bf16[2,4,32], index: 3, kind: output, shape index: {0}]   ;;  %s749_s4 = inlined_call_operand.vmem [shape: f32[2,2,32], index: 4, kind: output, shape index: {1}]  }
   0x1 LB: > { %s559_s16 = sadd.s32 4294967295, %s649_s15   ;;  %p563_p0 = scmp.ge.s32.totalorder %s649_s15, 1  ;;  %s649_s15 = sphi %s678_s15, %s15_s15  }
   0x2   : > { %p164_p1 = scmp.lt.s32.totalorder %s649_s15, 3 }
   0x4   : > { %p165_p2 = pnand %p563_p0, %p164_p1 }
   0x5   : > { %p192_p3 = scmp.lt.s32.totalorder (!%p165_p2), %s559_s16, 1 }
   0x6   : > { %168 = sbr.rel (%p165_p2) target bundleno = 276 (0x114), region = 32 }
   0xb   : > { %v635_v0 = vld [vmem:[%s747_s2 + $0x18] sm:$0xff]   ;;  %v651_v1 = vmov 0.0   ;;  %v636_v2 = vld [vmem:[%s747_s2 + $0x8] sm:$0xff]   ;;  %v637_v3 = vld [vmem:[%s747_s2 + $0x10] sm:$0xff]   ;;  %vm652_vm0 = vmmov 0   ;;  %s751_s16 = smov (!%p192_p3, %s559_s16), 1 }
   0xc   : > { %601 = vmatprep.subr.bf16.mxu0 %v651_v1  ;;  %609 = vmatprep.subr.bf16.mxu1 %v651_v1  ;;  %v638_v4 = vld [vmem:[%s747_s2] sm:$0xff]   ;;  %vm226_vm1 = vcmask 253952   ;;  %vm227_vm2 = vsmask.f32 256  ;;  %v229_v5 = vld [vmem:[#allocation3] sm:$0x1] }
   0xd   : > { %602 = vmatpush3.bf16.msra.mxu0 %v635_v0  ;;  %605 = vmatprep.mubr.msk.bf16.mxu0 %vm652_vm0, %v651_v1  ;;  %vm232_vm3 = vcmask 256002   ;;  %s564_s25 = sshll.u32 %s751_s16, 2  ;;  %vm228_vm4 = vmand %vm226_vm1, %vm227_vm2  ;;  %vm233_vm5 = vsmask.f32 7946  ;;  %v235_v6 = vld [vmem:[#allocation3] sm:$0x4] }
   0xe   : > { %610 = vmatpush3.bf16.msra.mxu1 %v636_v2  ;;  %603 = vmatprep.subr.bf16.mxu0 %v651_v1  ;;  %s195_s28 = scalar_lea.vmem %s745_s0, %s564_s25  ;;  %v567_v7 = vld [vmem:[%s746_s1] ss:$0 sm:$0xff]  ;;  %v230_v8 = vsel %vm228_vm4, 0, %v229_v5  ;;  %vm234_vm6 = vmand %vm232_vm3, %vm233_vm5  ;;  %v568_v12 = vld [vmem:[%s746_s1 + $0x1] ss:$0 sm:$0xff]  ;;  %vm220_vm7 = vcmask 261120  }
   0xf   : > { %611 = vmatprep.subr.bf16.mxu1 %v651_v1  ;;  %613 = vmatprep.mubr.msk.bf16.mxu1 %vm652_vm0, %v651_v1  ;;  %v205_v9 = vld [vmem:[%s195_s28] sm:$0xf]  ;;  %231 = vst [vmem:[#allocation3] sm:$0x1] %v230_v8  ;;  %v236_v10 = vsel %vm234_vm6, 0, %v235_v6  ;;  %vm250_vm8 = vcmask 256000  }
  0x10   : > { %v206_v11 = vunpack.c.l.bf16 %v205_v9  ;;  %237 = vst [vmem:[#allocation3] sm:$0x4] %v236_v10  ;;  %vm251_vm9 = vsmask.f32 2306  ;;  %v640_v31 = vld [vmem:[%s747_s2 + $0x28] sm:$0xff]   ;;  %v641_v34 = vld [vmem:[%s747_s2 + $0x20] sm:$0xff]  }
  0x11   : > { %604 = vmatpush3.bf16.msra.mxu0 %v637_v3  ;;  %vm252_vm10 = vmand %vm250_vm8, %vm251_vm9  ;;  %s565_s11 = sshll.u32 %s751_s16, 1  ;;  %vm453_vm11 = vcmask 257024   ;;  %vm473_vm12 = vcmask 254976  }
  0x12   : > { %612 = vmatpush3.bf16.msra.mxu1 %v638_v4  ;;  %617 = vmatprep.subr.bf16.mxu0 %v651_v1  ;;  %v212_v13 = vmul.f32 %v567_v7, %v206_v11  ;;  %s199_s14 = scalar_lea.vmem %s748_s3, %s565_s11  ;;  %s203_s18 = scalar_lea.vmem %s749_s4, %s565_s11 }
  0x14   : > { %v218_v14 = vadd.f32 %v568_v12, %v212_v13 }
  0x16   : > { %v219_v15 = vmax.f32 %v218_v14, 0.0 }
  0x17   : > { %v253_v23 = vld [vmem:[#allocation3] sm:$0x7] }
  0x18   : > { %221 = vst.msk [vmem:[#allocation2] sm:$0xff] %vm220_vm7, %v219_v15 }
  0x1f   : > { %v222_v16 = vld [vmem:[#allocation2] ss:$2 sm:$0xf]  ;;  %v224_v17 = vld [vmem:[#allocation2 + $0x1] ss:$2 sm:$0xf] }
  0x20   : > { %v225_v18 = vmax.f32 %v222_v16, %v224_v17 }
  0x22   : > { %v591_v19 = vpack.c.bf16 %v225_v18, %v225_v18 }
  0x24   : > { %v243_v20 = vshrl.u32 %v591_v19, 16  ;;  %v246_v21 = vshll.u32 %v591_v19, 16 }
  0x26   : > { %v245_v22 = vrot.slane %v243_v20, 7 }
  0x28   : > { %v248_v24 = vor.u32 %v246_v21, %v245_v22 }
  0x2a   : > { %v254_v25 = vsel %vm252_vm10, %v248_v24, %v253_v23 }
  0x2b   : > { %255 = vst [vmem:[#allocation3] sm:$0x7] %v254_v25 }
  0x32   : > { %v639_v26 = vld [vmem:[#allocation3] ss:$0 sps:$4 sm:$0x77]  }
  0x33   : > { %v256_v27 = vld [vmem:[#allocation3] sm:$0x3]  ;;  %v271_v28 = vshrl.u32 %v639_v26, 16  ;;  %v273_v29 = vshll.u32 %v639_v26, 16 }
  0x34   : > { %614 = vmatmul.mubr.msk.bf16.vlgmr.msra.gmra.mxu1 %vm220_vm7, %v256_v27  ;;  %v642_v33 = vld [vmem:[#allocation3] ss:$0 sps:$4 sm:$0x66]  }
  0x35   : > { %v275_v30 = vrot.slane %v273_v29, 1  ;;  %v396_v35 = vrot.slane %v642_v33, 1 }
  0x37   : > { %v276_v32 = vor.u32 %v275_v30, %v271_v28 }
  0x39   : > { %606 = vmatmul.mubr.msk.bf16.vlgmr.msra.gmra.mxu0 %vm220_vm7, %v276_v32 }
  0x3a   : > { %618 = vmatpush3.bf16.msra.mxu0 %v640_v31  ;;  %621 = vmatprep.mubr.msk.bf16.mxu0 %vm652_vm0, %v651_v1 }
  0x3b   : > { %619 = vmatprep.subr.bf16.mxu0 %v651_v1 }
  0x3e   : > { %620 = vmatpush3.bf16.msra.mxu0 %v641_v34 }
  0x41   : > { %622 = vmatmul.mubr.msk.bf16.vlgmr.msra.gmra.mxu0 %vm220_vm7, %v396_v35 }
  0xf4   : > { %v381_v36 = vpop.f32.mrf.mxu1 }
  0xf6   : > { %v615_v37 = vpop.f32.mrf.mxu1 }
  0xf8   : > { %v384_v38 = vpop.f32.mrf.mxu1 }
  0xf9   : > { %v326_v39 = vpop.f32.mrf.mxu0 }
  0xfa   : > { %v616_v40 = vpop.f32.mrf.mxu1  ;;  %v382_v44 = vadd.f32 %v381_v36, %v326_v39 }
  0xfb   : > { %v607_v41 = vpop.f32.mrf.mxu0 }
  0xfd   : > { %v329_v42 = vpop.f32.mrf.mxu0 }
  0xff   : > { %v608_v43 = vpop.f32.mrf.mxu0 }
 0x101   : > { %v446_v45 = vpop.f32.mrf.mxu0 }
 0x102   : > { %v452_v46 = vadd.f32 %v446_v45, %v382_v44 }
 0x103   : > { %v623_v47 = vpop.f32.mrf.mxu0 }
 0x104   : > { %v454_v48 = vsel %vm453_vm11, %v452_v46, 0.0  ;;  %v463_v49 = vmul.f32 %v452_v46, %v452_v46  ;;  %v472_v50 = vpack.c.bf16 %v452_v46, %v452_v46 }
 0x105   : > { %v455_v51 = vrot.slane %v454_v48, 4  ;;  %v449_v52 = vpop.f32.mrf.mxu0 }
 0x106   : > { %v464_v53 = vsel %vm453_vm11, %v463_v49, 0.0  ;;  %474 = vst.msk [vmem:[%s199_s14] sm:$0x3] %vm473_vm12, %v472_v50 }
 0x107   : > { %v456_v54 = vadd.f32 %v455_v51, %v454_v48  ;;  %v465_v55 = vrot.slane %v464_v53, 4  ;;  %v624_v56 = vpop.f32.mrf.mxu0 }
 0x109   : > { %v457_v57 = vrot.slane %v456_v54, 2  ;;  %v466_v58 = vadd.f32 %v465_v55, %v464_v53 }
 0x10b   : > { %v458_v59 = vadd.f32 %v457_v57, %v456_v54  ;;  %v467_v60 = vrot.slane %v466_v58, 2 }
 0x10d   : > { %v459_v61 = vrot.slane %v458_v59, 1  ;;  %v468_v62 = vadd.f32 %v467_v60, %v466_v58 }
 0x10f   : > { %v460_v63 = vadd.f32 %v459_v61, %v458_v59  ;;  %v469_v0 = vrot.slane %v468_v62, 1 }
 0x111   : > { %462 = vst.msk [vmem:[%s203_s18] sm:$0x1] %vm226_vm1, %v460_v63  ;;  %v470_v1 = vadd.f32 %v469_v0, %v468_v62 }
 0x113   : > { %471 = vst.msk [vmem:[%s203_s18 + $0x1] sm:$0x1] %vm226_vm1, %v470_v1 }
 0x114 PF: > { %s15_s15 = sadd.s32 1, %s649_s15  }
 0x115   : > { %p12_p4 = scmp.ge.s32.totalorder %s15_s15, 4  }
 0x117   :  { %14 = sbr.rel (!%p12_p4) target bundleno = 1 (0x1), region = 77 }

// kernel: net4cnn_forward.8
= control target key start
LH: loop header
LB: loop body
LE: loop exit
PB: predicated region body
PF: predicated region fallthrough
CT: control target
= control target key end

     0   :  { %s682_s15 = smov 0   ;;  %s756_s0 = inlined_call_operand.vmem [shape: bf16[2,4,32], index: 0, kind: input, shape index: {}]   ;;  %s757_s1 = inlined_call_operand.vmem [shape: f32[2,32], index: 1, kind: input, shape index: {}]   ;;  %s758_s2 = inlined_call_operand.vmem [shape: bf16[3,32,32], index: 2, kind: input, shape index: {}]   ;;  %s759_s3 = inlined_call_operand.vmem [shape: bf16[2,2,32], index: 3, kind: output, shape index: {0}]   ;;  %s760_s4 = inlined_call_operand.vmem [shape: f32[2,2,32], index: 4, kind: output, shape index: {1}]  }
   0x1 LB: > { %s566_s16 = sadd.s32 4294967295, %s652_s15   ;;  %p570_p0 = scmp.ge.s32.totalorder %s652_s15, 1  ;;  %s652_s15 = sphi %s682_s15, %s15_s15  }
   0x2   : > { %p164_p1 = scmp.lt.s32.totalorder %s652_s15, 3 }
   0x4   : > { %p165_p2 = pnand %p570_p0, %p164_p1 }
   0x5   : > { %p191_p3 = scmp.lt.s32.totalorder (!%p165_p2), %s566_s16, 1 }
   0x6   : > { %168 = sbr.rel (%p165_p2) target bundleno = 278 (0x116), region = 32 }
   0xb   : > { %v640_v0 = vld [vmem:[%s758_s2 + $0x18] sm:$0xff]   ;;  %v654_v1 = vmov 0.0   ;;  %v641_v2 = vld [vmem:[%s758_s2 + $0x8] sm:$0xff]   ;;  %v642_v3 = vld [vmem:[%s758_s2 + $0x10] sm:$0xff]   ;;  %vm655_vm0 = vmmov 0   ;;  %s762_s16 = smov (!%p191_p3, %s566_s16), 1  ;;  %v241_v18 = vlaneseq }
   0xc   : > { %605 = vmatprep.subr.bf16.mxu0 %v654_v1  ;;  %613 = vmatprep.subr.bf16.mxu1 %v654_v1  ;;  %v643_v4 = vld [vmem:[%s758_s2] sm:$0xff]   ;;  %vm224_vm1 = vcmask 253952   ;;  %vm225_vm2 = vsmask.f32 256  ;;  %vm230_vm3 = vcmask 254977   ;;  %s571_s25 = sshll.u32 %s762_s16, 1  ;;  %s197_s13 = scalar_lea.vmem %s759_s3, %s762_s16 }
   0xd   : > { %606 = vmatpush3.bf16.msra.mxu0 %v640_v0  ;;  %609 = vmatprep.mubr.msk.bf16.mxu0 %vm655_vm0, %v654_v1  ;;  %v227_v5 = vld [vmem:[#allocation3] sm:$0x1]  ;;  %vm226_vm4 = vmand %vm224_vm1, %vm225_vm2  ;;  %vm231_vm5 = vsmask.f32 7942  ;;  %v233_v6 = vld [vmem:[#allocation3] sm:$0x2]  ;;  %s194_s28 = scalar_lea.vmem %s756_s0, %s571_s25  ;;  %s201_s18 = scalar_lea.vmem %s760_s4, %s571_s25 }
   0xe   : > { %614 = vmatpush3.bf16.msra.mxu1 %v641_v2  ;;  %607 = vmatprep.subr.bf16.mxu0 %v654_v1  ;;  %v573_v7 = vld [vmem:[%s757_s1] ss:$0 sm:$0xff]  ;;  %v228_v8 = vsel %vm226_vm4, 0, %v227_v5  ;;  %vm232_vm6 = vmand %vm230_vm3, %vm231_vm5  ;;  %v574_v12 = vld [vmem:[%s757_s1 + $0x1] ss:$0 sm:$0xff]  ;;  %vm218_vm7 = vcmask 257024  }
   0xf   : > { %615 = vmatprep.subr.bf16.mxu1 %v654_v1  ;;  %617 = vmatprep.mubr.msk.bf16.mxu1 %vm655_vm0, %v654_v1  ;;  %v203_v9 = vld [vmem:[%s194_s28] sm:$0x3]  ;;  %229 = vst [vmem:[#allocation3] sm:$0x1] %v228_v8  ;;  %v234_v10 = vsel %vm232_vm6, 0, %v233_v6  ;;  %v242_v20 = vshrl.u32 %v241_v18, 7 }
  0x10   : > { %v204_v11 = vunpack.c.l.bf16 %v203_v9  ;;  %235 = vst [vmem:[#allocation3] sm:$0x2] %v234_v10  ;;  %v656_v16 = vmov 1983009808   ;;  %vm253_vm8 = vcmask 254976   ;;  %vm297_vm11 = vcmask 261120  }
  0x11   : > { %608 = vmatpush3.bf16.msra.mxu0 %v642_v3  ;;  %v239_v17 = vunpack.c.l.s4 %v656_v16  ;;  %vm254_vm9 = vsmask.f32 1282  ;;  %v644_v38 = vld [vmem:[%s758_s2 + $0x28] sm:$0xff]   ;;  %v645_v40 = vld [vmem:[%s758_s2 + $0x20] sm:$0xff]  }
  0x12   : > { %616 = vmatpush3.bf16.msra.mxu1 %v643_v4  ;;  %621 = vmatprep.subr.bf16.mxu0 %v654_v1  ;;  %v210_v13 = vmul.f32 %v573_v7, %v204_v11  ;;  %vm255_vm10 = vmand %vm253_vm8, %vm254_vm9 }
  0x13   : > { %v240_v19 = vunpack.c.0.s8 %v239_v17 }
  0x14   : > { %v216_v14 = vadd.f32 %v574_v12, %v210_v13 }
  0x15   : > { %v243_v24 = vsub.s32 %v240_v19, %v242_v20 }
  0x16   : > { %v217_v15 = vmax.f32 %v216_v14, 0.0 }
  0x17   : > { %v256_v30 = vld [vmem:[#allocation3] sm:$0x3] }
  0x18   : > { %219 = vst.msk [vmem:[#allocation2] sm:$0xf] %vm218_vm7, %v217_v15 }
  0x1f   : > { %v220_v21 = vld [vmem:[#allocation2] ss:$2 sm:$0x3]  ;;  %v222_v22 = vld [vmem:[#allocation2 + $0x1] ss:$2 sm:$0x3] }
  0x20   : > { %v223_v23 = vmax.f32 %v220_v21, %v222_v22 }
  0x22   : > { %v236_v25 = vpack.c.bf16 %v223_v23, %v223_v23 }
  0x24   : > { %v244_v26 = vrot.slane %v236_v25, %v243_v24 }
  0x26   : > { %v246_v27 = vshrl.u32 %v244_v26, 16  ;;  %v249_v28 = vshll.u32 %v244_v26, 16 }
  0x28   : > { %v248_v29 = vrot.slane %v246_v27, 7 }
  0x2a   : > { %v251_v31 = vor.u32 %v249_v28, %v248_v29 }
  0x2c   : > { %v257_v32 = vsel %vm255_vm10, %v251_v31, %v256_v30 }
  0x2d   : > { %258 = vst [vmem:[#allocation3] sm:$0x3] %v257_v32 }
  0x34   : > { %v579_v33 = vld.sshfl [vmem:[#allocation3] sm:$0x3 pattern:$0x76325410] }
  0x35   : > { %v259_v34 = vld [vmem:[#allocation3] sm:$0x1]  ;;  %v279_v35 = vshrl.u32 %v579_v33, 16  ;;  %v281_v36 = vshll.u32 %v579_v33, 16 }
  0x36   : > { %618 = vmatmul.mubr.msk.bf16.vlgmr.msra.gmra.mxu1 %vm297_vm11, %v259_v34  ;;  %v590_v41 = vld.sshfl [vmem:[#allocation3] sm:$0x2 pattern:$0x76325410] }
  0x37   : > { %v283_v37 = vrot.slane %v281_v36, 1  ;;  %v410_v42 = vrot.slane %v590_v41, 1 }
  0x39   : > { %v284_v39 = vor.u32 %v283_v37, %v279_v35 }
  0x3b   : > { %610 = vmatmul.mubr.msk.bf16.vlgmr.msra.gmra.mxu0 %vm297_vm11, %v284_v39 }
  0x3c   : > { %622 = vmatpush3.bf16.msra.mxu0 %v644_v38  ;;  %625 = vmatprep.mubr.msk.bf16.mxu0 %vm655_vm0, %v654_v1 }
  0x3d   : > { %623 = vmatprep.subr.bf16.mxu0 %v654_v1 }
  0x40   : > { %624 = vmatpush3.bf16.msra.mxu0 %v645_v40 }
  0x43   : > { %626 = vmatmul.mubr.msk.bf16.vlgmr.msra.gmra.mxu0 %vm297_vm11, %v410_v42 }
  0xf6   : > { %v390_v43 = vpop.f32.mrf.mxu1 }
  0xf8   : > { %v619_v44 = vpop.f32.mrf.mxu1 }
  0xfa   : > { %v393_v45 = vpop.f32.mrf.mxu1 }
  0xfb   : > { %v335_v46 = vpop.f32.mrf.mxu0 }
  0xfc   : > { %v620_v47 = vpop.f32.mrf.mxu1  ;;  %v391_v51 = vadd.f32 %v390_v43, %v335_v46 }
  0xfd   : > { %v611_v48 = vpop.f32.mrf.mxu0 }
  0xff   : > { %v338_v49 = vpop.f32.mrf.mxu0 }
 0x101   : > { %v612_v50 = vpop.f32.mrf.mxu0 }
 0x103   : > { %v460_v52 = vpop.f32.mrf.mxu0 }
 0x104   : > { %v466_v53 = vadd.f32 %v460_v52, %v391_v51 }
 0x105   : > { %v627_v54 = vpop.f32.mrf.mxu0 }
 0x106   : > { %v468_v55 = vsel %vm253_vm8, %v466_v53, 0.0  ;;  %v477_v56 = vmul.f32 %v466_v53, %v466_v53  ;;  %v486_v57 = vpack.c.bf16 %v466_v53, %v466_v53 }
 0x107   : > { %v469_v58 = vrot.slane %v468_v55, 4  ;;  %v463_v59 = vpop.f32.mrf.mxu0 }
 0x108   : > { %v478_v60 = vsel %vm253_vm8, %v477_v56, 0.0  ;;  %487 = vst.msk [vmem:[%s197_s13] sm:$0x1] %vm224_vm1, %v486_v57 }
 0x109   : > { %v470_v61 = vadd.f32 %v469_v58, %v468_v55  ;;  %v479_v62 = vrot.slane %v478_v60, 4  ;;  %v628_v63 = vpop.f32.mrf.mxu0 }
 0x10b   : > { %v471_v0 = vrot.slane %v470_v61, 2  ;;  %v480_v1 = vadd.f32 %v479_v62, %v478_v60 }
 0x10d   : > { %v472_v2 = vadd.f32 %v471_v0, %v470_v61  ;;  %v481_v3 = vrot.slane %v480_v1, 2 }
 0x10f   : > { %v473_v4 = vrot.slane %v472_v2, 1  ;;  %v482_v5 = vadd.f32 %v481_v3, %v480_v1 }
 0x111   : > { %v474_v6 = vadd.f32 %v473_v4, %v472_v2  ;;  %v483_v7 = vrot.slane %v482_v5, 1 }
 0x113   : > { %476 = vst.msk [vmem:[%s201_s18] sm:$0x1] %vm224_vm1, %v474_v6  ;;  %v484_v8 = vadd.f32 %v483_v7, %v482_v5 }
 0x115   : > { %485 = vst.msk [vmem:[%s201_s18 + $0x1] sm:$0x1] %vm224_vm1, %v484_v8 }
 0x116 PF: > { %s15_s15 = sadd.s32 1, %s652_s15  }
 0x117   : > { %p12_p4 = scmp.ge.s32.totalorder %s15_s15, 4  }
 0x119   :  { %14 = sbr.rel (!%p12_p4) target bundleno = 1 (0x1), region = 77 }

// kernel: net4cnn_forward.9
= control target key start
LH: loop header
LB: loop body
LE: loop exit
PB: predicated region body
PF: predicated region fallthrough
CT: control target
= control target key end

     0   :  { %7 = vsyncpa [#allocation4], 0  ;;  %s442_s0 = inlined_call_operand.vmem [shape: bf16[2,2,32], index: 0, kind: input, shape index: {}]   ;;  %s443_s1 = inlined_call_operand.vmem [shape: f32[2,32], index: 1, kind: input, shape index: {}]   ;;  %s444_s2 = inlined_call_operand.hbm [shape: f32[2,1,32], index: 2, kind: output, shape index: {}]  }
   0x1   :  { %9 = vsyncpa [#allocation4 + $0x1], 0  ;;  %s349_s9 = smov 0   ;;  %s351_s10 = smov 0  }
   0x2   :  { %s353_s11 = smov 0   ;;  %s355_s12 = smov 0  }
   0x3 LB: > { %s370_s13 = sadd.s32 4294967295, %s331_s12   ;;  %s223_s14 = sadd.s32 4294967294, %s331_s12   ;;  %s331_s12 = sphi %s355_s12, %s450_s12   ;;  %s327_s11 = sphi %s353_s11, %s449_s11   ;;  %s323_s10 = sphi %s351_s10, %s448_s10   ;;  %s319_s9 = sphi %s349_s9, %s447_s9  }
   0x4   : > { %s374_s15 = sadd.s32 1, %s331_s12   ;;  %s69_s16 = sadd.s32 1, %s327_s11 }
   0x5   : > { %s66_s17 = ssub.s32 %s331_s12, %s374_s15  ;;  %p79_p0 = scmp.ne.s32.totalorder %s327_s11, %s323_s10 }
   0x6   : > { %p67_p1 = scmp.eq.s32.totalorder %s66_s17, 0  ;;  %p80_p2 = scmp.eq.s32.totalorder %s370_s13, 1 }
   0x7   : > { %p85_p3 = scmp.ne.s32.totalorder %s323_s10, %s319_s9  ;;  %p86_p4 = scmp.eq.s32.totalorder %s223_s14, 1 }
   0x8   : > { %s385_s18 = scalar_select %p67_p1, %s327_s11, %s69_s16  }
   0x9   : > { %p387_p5 = por %p80_p2, %p79_p0  ;;  %p391_p6 = por %p86_p4, %p85_p3 }
   0xa   : > { %p226_p7 = scmp.ge.s32.totalorder %s331_s12, 1  ;;  %p113_p8 = scmp.lt.s32.totalorder %s331_s12, 3 }
   0xc   : > { %p114_p9 = pnand %p226_p7, %p113_p8 }
   0xd   : > { %p132_p10 = scmp.lt.s32.totalorder (!%p114_p9), %s370_s13, 1  ;;  %s130_s29 = sand.u32 (!%p114_p9), 1, %s323_s10  }
   0xe   : > { %117 = sbr.rel (%p114_p9) target bundleno = 54 (0x36), region = 28  ;;  %s131_s30 = scalar_lea.vmem (!%p114_p9), [#allocation3], %s130_s29 }
   0xf   : > { %s171_s3 = sshll.u32 (!%p114_p9), %s131_s30, 4  ;;  %s229_s4 = sshll.u32 (!%p114_p9), %s370_s13, 4  ;;  %s172_s3 = int_to_ptr.vmem [resolvable:$true] %s171_s3 }
  0x10   : > { %s169_s7 = scalar_lea.hbm (!%p114_p9), %s444_s2, %s229_s4  ;;  %s159_s8 = scalar_lea.sflag (!%p114_p9), [#allocation4], %s130_s29 }
  0x11   : > { %s271_s14 = scalar_lea.vmem (!%p114_p9), %s172_s3, 16  ;;  %s333_s16 = smov (!%p114_p9), [#allocation3]  }
  0x12   : > { %p272_p11 = scmp.ne.s32.totalorder (!%p114_p9), %s172_s3, %s271_s14  ;;  %s275_s17 = sshll.u32 (!%p114_p9), %s333_s16, 4  ;;  %s276_s17 = int_to_ptr.vmem [resolvable:$false] %s275_s17 }
  0x13   : > { %s133_s21 = scalar_select %p132_p10, %s370_s13, 1  ;;  %v227_v1 = vld [vmem:[%s443_s1] ss:$0 sm:$0xff]  ;;  %v228_v3 = vld [vmem:[%s443_s1 + $0x1] ss:$0 sm:$0xff]  ;;  %vm150_vm0 = vcmask 254976  }
  0x14   : > { %vm156_vm1 = vcmask 253952   ;;  %p273_p12 = pnand %p272_p11, %p387_p5  ;;  %s277_s13 = scalar_lea.vmem %s276_s17, 32 }
  0x15   : > { %s134_s24 = scalar_lea.vmem %s442_s0, %s133_s21  ;;  %p278_p0 = scmp.lt.s32.totalorder %s172_s3, %s276_s17 }
  0x16   : > { %v135_v0 = vld [vmem:[%s134_s24] sm:$0x1]  ;;  %p274_p13 = pneg %p273_p12  ;;  %p279_p1 = scmp.lt.s32.totalorder %s277_s13, %s271_s14 }
  0x17   : > { %v136_v2 = vunpack.c.l.bf16 %v135_v0 }
  0x18   : > { %p280_p2 = por %p279_p1, %p278_p0 }
  0x19   : > { %v142_v4 = vmul.f32 %v227_v1, %v136_v2 }
  0x1a   : > { %p281_p3 = pnand %p280_p2, %p274_p13 }
  0x1b   : > { %v148_v5 = vadd.f32 %v228_v3, %v142_v4 }
  0x1d   : > { %v149_v6 = vmax.f32 %v148_v5, 0.0 }
  0x1f   : > { %151 = vst.msk [vmem:[#allocation2] sm:$0x3] %vm150_vm0, %v149_v6 }
  0x26   : > { %v152_v7 = vld [vmem:[#allocation2] ss:$2 sm:$0x1]  ;;  %v154_v8 = vld [vmem:[#allocation2 + $0x1] ss:$2 sm:$0x1] }
  0x27   : > { %v155_v9 = vmax.f32 %v152_v7, %v154_v8 }
  0x29   : > { %157 = vst.msk [vmem:[%s131_s30] sm:$0x1] %vm156_vm1, %v155_v9 }
  0x2a   : > { %284 = shalt.err (!%p281_p3)
}
  0x2b   : > { %s285_s21 = scalar_lea.hbm %s169_s7, 16  ;;  %s289_s24 = scalar_lea.hbm %s444_s2, 32 }
  0x2c   : > { %p286_p4 = scmp.ne.s32.totalorder %s169_s7, %s285_s21  ;;  %p290_p9 = scmp.lt.s32.totalorder %s169_s7, %s444_s2 }
  0x2d   : > { %p291_p10 = scmp.lt.s32.totalorder %s289_s24, %s285_s21 }
  0x2e   : > { %p287_p7 = pnand %p286_p4, %p387_p5 }
  0x2f   : > { %p292_p11 = por %p291_p10, %p290_p9 }
  0x30   : > { %p288_p8 = pneg %p287_p7 }
  0x32   : > { %p293_p12 = pnand %p292_p11, %p288_p8 }
  0x34   : > { %296 = shalt.err (!%p293_p12)
}
  0x35   : > { %232 = dma.vmem_to_hbm [thread:$0]  (%p387_p5), %s172_s3, 16, %s169_s7, %s159_s8  }
  0x36 PF: > { %p238_p13 = scmp.ge.s32.totalorder %s331_s12, 2  ;;  %s183_s27 = sand.u32 1, %s319_s9  }
  0x37   : > { %s184_s28 = scalar_lea.sflag [#allocation4], %s183_s27 }
  0x38   : > { %p235_p0 = pnand %p238_p13, %p391_p6 }
  0x3a   : > { %p236_p1 = pneg %p235_p0 }
  0x3c   : > { %314 = dma.done.wait (%p236_p1), %s184_s28, 16  }
  0x3d   : > { %316 = vsyncadd (%p236_p1), %s184_s28, 4294967280  ;;  %p12_p2 = scmp.ge.s32.totalorder %s374_s15, 4   ;;  %s447_s9 = smov %s323_s10 }
  0x3e   : > { %s448_s10 = smov %s327_s11  ;;  %s449_s11 = smov %s385_s18 }
  0x3f   : > { %s450_s12 = smov %s374_s15  ;;  %14 = sbr.rel (!%p12_p2) target bundleno = 3 (0x3), region = 64 }
  0x44   :  { %188 = vsyncpa [#allocation4], 1 }
  0x45   :  { %190 = vsyncpa [#allocation4 + $0x1], 1 }

</bundles_post_ra>
